<compile_context>
chip_gen: v7x
topology: tpu7x:2x2x1
jax: 0.10.0
libtpu: 0.0.40
codegen_flags: <defaults>
</compile_context>

<pallas_src>
import functools

import jax
import jax.numpy as jnp
from jax.experimental import pallas as pl
from jax.experimental.pallas import tpu as pltpu


def _round_up(x, m):
    return ((x + m - 1) // m) * m


def _default_build_dtype():
    """bf16 weight/select build on chips with a bf16 VALU (v6e/v7x);
    f32 on v5e and older (16-bit vector math is emulated there)."""
    try:
        kind = jax.devices()[0].device_kind.lower()
    except Exception:
        return jnp.float32
    if "v6" in kind or "v7" in kind:
        return jnp.bfloat16
    return jnp.float32


def _warp_kernel(qs_ref, qlo_ref, qhi_ref,        # scalar prefetch (SMEM)
                 img_ref, wts_ref, idx_ref,       # inputs  (VMEM tiles)
                 out_ref,                         # output  (VMEM tile)
                 acc_ref,                         # f32 scratch accumulator
                 *, W):
    b = pl.program_id(0)
    p = pl.program_id(1)
    q = pl.program_id(2)

    @pl.when(q == 0)
    def _():
        acc_ref[...] = jnp.zeros_like(acc_ref)

    TQ = img_ref.shape[1]
    TP = wts_ref.shape[1]
    qb = qs_ref[b, p] + q                     # actual q-block index (band offset)

    # Skip the O(TQ*TP) one-hot build + matmul for q blocks that cannot hold
    # any corner referenced by this p-tile (this is where the VALU time goes).
    @pl.when((qb >= qlo_ref[b, p]) & (qb <= qhi_ref[b, p]))
    def _():
        q_base = qb * TQ
        # Per-output-pixel corner weights / base index were precomputed in the
        # wrapper (hoisted out of the q loop).  dtype is bf16 on v6e/v7x.
        w00 = wts_ref[0:1, :]
        w10 = wts_ref[1:2, :]
        w01 = wts_ref[2:3, :]
        w11 = wts_ref[3:4, :]
        t00 = idx_ref[0:1, :] - q_base        # (1, TP) corner targets, local q
        t10 = t00 + 1
        t01 = t00 + W
        t11 = t00 + W + 1
        q_local = jax.lax.broadcasted_iota(jnp.int32, (TQ, TP), 0)
        zero = jnp.zeros((), dtype=wts_ref.dtype)
        # OOB corners already carry zero weight, so any index aliasing of
        # invalid corners contributes nothing.
        n = jnp.where(q_local == t00, w00,
            jnp.where(q_local == t10, w10,
            jnp.where(q_local == t01, w01,
            jnp.where(q_local == t11, w11, zero))))
        acc_ref[...] += jnp.dot(img_ref[...], n.astype(jnp.bfloat16),
                                preferred_element_type=jnp.float32)

    @pl.when(q == pl.num_programs(2) - 1)
    def _():
        out_ref[...] = acc_ref[...].astype(out_ref.dtype)


def backward_warping(img, flow, *, tile_p=512, tile_q=1024, build_dtype=None):
    """Pallas equivalent of BackwardWarping(W, H).forward(img, flow)."""
    B, C, H, W = img.shape
    assert flow.shape == (B, 2, H, W)
    assert H >= 1 and W >= 1
    HW = H * W
    f32 = jnp.float32

    if build_dtype is None:
        build_dtype = _default_build_dtype()

    # --- tile sizes (multiples of 128); spatial extent is zero-padded so the
    # old full-extent (HW, HW) fallback slab can never materialize.
    tile_p = max(128, (int(tile_p) // 128) * 128)
    tile_q = max(128, (int(tile_q) // 128) * 128)
    hw128 = _round_up(HW, 128)
    TP = min(tile_p, hw128)
    TQ = min(tile_q, hw128)
    if B == 1 and hw128 >= 256:
        # keep >= 2 p-tiles at batch 1 so the "parallel" axes feed both
        # TensorCores / megacore
        TP = min(TP, max(128, _round_up((HW + 1) // 2, 128)))
    HW_p = _round_up(HW, TP); n_p = HW_p // TP
    HW_q = _round_up(HW, TQ); n_q = HW_q // TQ

    # --- per-output-pixel precompute (O(HW), hoisted out of the q loop):
    # grid_sample unnormalization, bilinear weights with zero-padding masks,
    # and the flattened base corner index.
    flow_f = flow.reshape(B, 2, HW).astype(f32)
    p_i = jnp.arange(HW, dtype=jnp.int32)
    gY = (p_i // W).astype(f32)[None]
    gX = (p_i % W).astype(f32)[None]
    x = gX + flow_f[:, 0, :]
    y = gY + flow_f[:, 1, :]
    gx = 2.0 * (x / W - 0.5)
    gy = 2.0 * (y / H - 0.5)
    ix = ((gx + 1.0) * W - 1.0) * 0.5          # align_corners=False unnormalize
    iy = ((gy + 1.0) * H - 1.0) * 0.5
    x0f = jnp.floor(ix); y0f = jnp.floor(iy)
    fx = ix - x0f;       fy = iy - y0f
    x0 = x0f.astype(jnp.int32); y0 = y0f.astype(jnp.int32)
    x1 = x0 + 1;                y1 = y0 + 1
    x0_ok = (x0 >= 0) & (x0 < W); x1_ok = (x1 >= 0) & (x1 < W)
    y0_ok = (y0 >= 0) & (y0 < H); y1_ok = (y1 >= 0) & (y1 < H)
    v00 = x0_ok & y0_ok; v10 = x1_ok & y0_ok
    v01 = x0_ok & y1_ok; v11 = x1_ok & y1_ok
    w00 = jnp.where(v00, (1.0 - fx) * (1.0 - fy), 0.0)
    w10 = jnp.where(v10, fx * (1.0 - fy), 0.0)
    w01 = jnp.where(v01, (1.0 - fx) * fy, 0.0)
    w11 = jnp.where(v11, fx * fy, 0.0)
    if W == 1:
        # Degenerate width: corner offsets 1 and W collide in the kernel's
        # nested select.  x1 is always OOB (w10 == 0), so fold w01 into w10
        # (same flattened index when W == 1).
        w10 = w10 + w01
        w01 = jnp.zeros_like(w01)
    idx00 = y0 * W + x0                        # (B, HW) int32

    # --- per-(batch, p-tile) band of input pixels actually referenced
    # (only corners with nonzero weight matter).
    c00 = idx00; c10 = idx00 + 1; c01 = idx00 + W; c11 = idx00 + W + 1
    lo_pix = jnp.minimum(
        jnp.minimum(jnp.where(v00, c00, HW_q), jnp.where(v10, c10, HW_q)),
        jnp.minimum(jnp.where(v01, c01, HW_q), jnp.where(v11, c11, HW_q)))
    hi_pix = jnp.maximum(
        jnp.maximum(jnp.where(v00, c00, -1), jnp.where(v10, c10, -1)),
        jnp.maximum(jnp.where(v01, c01, -1), jnp.where(v11, c11, -1)))

    pad_p = HW_p - HW
    lo_t = jnp.pad(lo_pix, ((0, 0), (0, pad_p)), constant_values=HW_q)
    hi_t = jnp.pad(hi_pix, ((0, 0), (0, pad_p)), constant_values=-1)
    lo_t = lo_t.reshape(B, n_p, TP).min(axis=-1)          # (B, n_p)
    hi_t = hi_t.reshape(B, n_p, TP).max(axis=-1)
    has = hi_t >= 0
    q_lo = jnp.where(has, jnp.clip(lo_t // TQ, 0, n_q - 1), 0)
    q_hi = jnp.where(has, hi_t // TQ, -1)
    band_len = jnp.where(has, q_hi - q_lo + 1, 0)
    try:
        # Concrete outside jit: shrink the q grid to the longest band so
        # out-of-band q blocks are never DMA'd or iterated.
        n_band = int(jnp.max(band_len))
        n_band = max(1, min(n_band, n_q))
    except Exception:
        # TODO(synk): under jit the data-dependent band length cannot set the
        # static grid; fall back to the full q range (the in-kernel pl.when
        # still skips the heavy work for out-of-band blocks).
        n_band = n_q
    q_start = jnp.clip(q_lo, 0, n_q - n_band).astype(jnp.int32)
    q_lo = q_lo.astype(jnp.int32)
    q_hi = q_hi.astype(jnp.int32)

    # --- lane-dense operand slabs (pad spatial dim; cast once in the wrapper).
    img_b = img.reshape(B, C, HW).astype(jnp.bfloat16)
    img_b = jnp.pad(img_b, ((0, 0), (0, 0), (0, HW_q - HW)))
    wts = jnp.stack([w00, w10, w01, w11], axis=1)          # (B, 4, HW)
    wts = jnp.pad(wts, ((0, 0), (0, 0), (0, pad_p))).astype(build_dtype)
    idx_in = jnp.pad(idx00, ((0, 0), (0, pad_p)))[:, None, :].astype(jnp.int32)

    grid_spec = pltpu.PrefetchScalarGridSpec(
        num_scalar_prefetch=3,
        grid=(B, n_p, n_band),
        in_specs=[
            pl.BlockSpec((None, C, TQ),
                         lambda b, p, q, qs, ql, qh: (b, 0, qs[b, p] + q)),
            pl.BlockSpec((None, 4, TP),
                         lambda b, p, q, qs, ql, qh: (b, 0, p)),
            pl.BlockSpec((None, 1, TP),
                         lambda b, p, q, qs, ql, qh: (b, 0, p)),
        ],
        out_specs=pl.BlockSpec((None, C, TP),
                               lambda b, p, q, qs, ql, qh: (b, 0, p)),
        scratch_shapes=[pltpu.VMEM((C, TP), jnp.float32)],
    )

    out_flat = pl.pallas_call(
        functools.partial(_warp_kernel, W=W),
        out_shape=jax.ShapeDtypeStruct((B, C, HW_p), img.dtype),
        grid_spec=grid_spec,
        compiler_params=pltpu.CompilerParams(
            dimension_semantics=("parallel", "parallel", "arbitrary"),
            vmem_limit_bytes=32 * 1024 * 1024),
    )(q_start, q_lo, q_hi, img_b, wts, idx_in)

    return out_flat[:, :, :HW].reshape(B, C, H, W)


def _reference_warp(img, flow):
    """Pure-JAX reference (direct gather) for correctness checking."""
    B, C, H, W = img.shape
    gX = jnp.arange(W, dtype=jnp.float32)[None, None, :]
    gY = jnp.arange(H, dtype=jnp.float32)[None, :, None]
    x = gX + flow[:, 0]
    y = gY + flow[:, 1]
    gx = 2.0 * (x / W - 0.5)
    gy = 2.0 * (y / H - 0.5)
    ix = ((gx + 1.0) * W - 1.0) * 0.5
    iy = ((gy + 1.0) * H - 1.0) * 0.5
    x0 = jnp.floor(ix).astype(jnp.int32)
    y0 = jnp.floor(iy).astype(jnp.int32)
    fx = ix - x0
    fy = iy - y0

    def sample(xi, yi):
        valid = (xi >= 0) & (xi < W) & (yi >= 0) & (yi < H)
        xc = jnp.clip(xi, 0, W - 1)
        yc = jnp.clip(yi, 0, H - 1)

        def per_batch(im, yy, xx, va):
            vals = im[:, yy, xx]                       # (C, H, W)
            return jnp.where(va[None], vals, 0.0)

        return jax.vmap(per_batch)(img, yc, xc, valid)

    out = (sample(x0, y0) * ((1 - fx) * (1 - fy))[:, None]
           + sample(x0 + 1, y0) * (fx * (1 - fy))[:, None]
           + sample(x0, y0 + 1) * ((1 - fx) * fy)[:, None]
           + sample(x0 + 1, y0 + 1) * (fx * fy)[:, None])
    return out.astype(img.dtype)


if __name__ == "__main__":
    key = jax.random.PRNGKey(0)
    k_img, k_flow, k_img2, k_flow2 = jax.random.split(key, 4)

    B, C, H, W = 2, 4, 16, 16
    img = jax.random.normal(k_img, (B, C, H, W), dtype=jnp.float32)
    # flow displacements of a few pixels (including out-of-bounds samples)
    flow = 3.0 * jax.random.normal(k_flow, (B, 2, H, W), dtype=jnp.float32)
    ref = _reference_warp(img, flow)

    # 1) default tiling (single p/q tile at this size)
    out = backward_warping(img, flow)
    jax.block_until_ready(out)
    assert out.shape == (B, C, H, W)
    err = jnp.max(jnp.abs(out - ref))
    assert jnp.allclose(out, ref, atol=1e-1, rtol=1e-2), f"max abs err {err}"

    # 2) force multi-tile path (exercises p/q tiling, band skip, f32 accumulator)
    out_t = backward_warping(img, flow, tile_p=128, tile_q=128)
    jax.block_until_ready(out_t)
    err_t = jnp.max(jnp.abs(out_t - ref))
    assert jnp.allclose(out_t, ref, atol=1e-1, rtol=1e-2), f"max abs err {err_t}"

    # 3) non-128-multiple spatial extent + batch 1 (exercises zero-padding path)
    B2, C2, H2, W2 = 1, 3, 10, 10
    img2 = jax.random.normal(k_img2, (B2, C2, H2, W2), dtype=jnp.float32)
    flow2 = 2.0 * jax.random.normal(k_flow2, (B2, 2, H2, W2), dtype=jnp.float32)
    ref2 = _reference_warp(img2, flow2)
    out2 = backward_warping(img2, flow2)
    jax.block_until_ready(out2)
    err2 = jnp.max(jnp.abs(out2 - ref2))
    assert jnp.allclose(out2, ref2, atol=1e-1, rtol=1e-2), f"max abs err {err2}"

    print("KERNEL_OK")
</pallas_src>

<mosaic_0001>
module attributes {stable_mosaic.version = 11 : i64} {
  func.func @_warp_kernel(%arg0: i32, %arg1: i32, %arg2: i32, %arg3: memref<2x1xi32, #tpu.memory_space<smem>>, %arg4: memref<2x1xi32, #tpu.memory_space<smem>>, %arg5: memref<2x1xi32, #tpu.memory_space<smem>>, %arg6: memref<1x4x256xbf16, #tpu.memory_space<vmem>>, %arg7: memref<1x4x256xf32, #tpu.memory_space<vmem>>, %arg8: memref<1x1x256xi32, #tpu.memory_space<vmem>>, %arg9: memref<1x4x256xf32, #tpu.memory_space<vmem>>, %arg10: memref<4x256xf32, #tpu.memory_space<vmem>>) attributes {dimension_semantics = [#tpu.dimension_semantics<parallel>, #tpu.dimension_semantics<parallel>, #tpu.dimension_semantics<arbitrary>], iteration_bounds = array<i64: 2, 1, 1>, scalar_prefetch = 3 : i64, scratch_operands = 1 : i64, tpu.core_type = #tpu.core_type<tc>, window_params = [{transform_indices = @transform_0, window_bounds = array<i64: 1, 4, 256>}, {transform_indices = @transform_1, window_bounds = array<i64: 1, 4, 256>}, {transform_indices = @transform_2, window_bounds = array<i64: 1, 1, 256>}, {transform_indices = @transform_3, window_bounds = array<i64: 1, 4, 256>}]} {
    %c0_i32 = arith.constant 0 : i32
    %0 = arith.cmpi eq, %arg2, %c0_i32 : i32
    %1 = arith.extui %0 : i1 to i32
    %c0_i32_0 = arith.constant 0 : i32
    %2 = arith.cmpi ne, %1, %c0_i32_0 : i32
    scf.if %2 {
      %cst = arith.constant 0.000000e+00 : f32
      %21 = vector.broadcast %cst : f32 to vector<4x256xf32>
      %c0 = arith.constant 0 : index
      %c0_4 = arith.constant 0 : index
      %22 = vector.load %arg10[%c0, %c0_4] : memref<4x256xf32, #tpu.memory_space<vmem>>, vector<4x256xf32>
      tpu.vector_store %arg10[%c0, %c0_4], %21 {strides = array<i32>} : memref<4x256xf32, #tpu.memory_space<vmem>>, vector<4x256xf32>,
    } else {
    }
    %3 = arith.index_cast %arg0 : i32 to index
    %4 = arith.index_cast %arg1 : i32 to index
    %5 = memref.load %arg3[%3, %4] : memref<2x1xi32, #tpu.memory_space<smem>>
    %6 = arith.addi %5, %arg2 : i32
    %7 = arith.index_cast %arg0 : i32 to index
    %8 = arith.index_cast %arg1 : i32 to index
    %9 = memref.load %arg4[%7, %8] : memref<2x1xi32, #tpu.memory_space<smem>>
    %10 = arith.cmpi sge, %6, %9 : i32
    %11 = arith.index_cast %arg0 : i32 to index
    %12 = arith.index_cast %arg1 : i32 to index
    %13 = memref.load %arg5[%11, %12] : memref<2x1xi32, #tpu.memory_space<smem>>
    %14 = arith.cmpi sle, %6, %13 : i32
    %15 = arith.andi %10, %14 : i1
    %16 = arith.extui %15 : i1 to i32
    %c0_i32_1 = arith.constant 0 : i32
    %17 = arith.cmpi ne, %16, %c0_i32_1 : i32
    scf.if %17 {
      %c256_i32 = arith.constant 256 : i32
      %21 = arith.muli %6, %c256_i32 : i32
      %c0 = arith.constant 0 : index
      %c0_4 = arith.constant 0 : index
      %c0_5 = arith.constant 0 : index
      %22 = vector.load %arg7[%c0, %c0_4, %c0_5] : memref<1x4x256xf32, #tpu.memory_space<vmem>>, vector<1x1x256xf32>
      %23 = vector.shape_cast %22 : vector<1x1x256xf32> to vector<1x256xf32>
      %c0_6 = arith.constant 0 : index
      %c1 = arith.constant 1 : index
      %c0_7 = arith.constant 0 : index
      %24 = vector.load %arg7[%c0_6, %c1, %c0_7] : memref<1x4x256xf32, #tpu.memory_space<vmem>>, vector<1x1x256xf32>
      %25 = vector.shape_cast %24 : vector<1x1x256xf32> to vector<1x256xf32>
      %c0_8 = arith.constant 0 : index
      %c2 = arith.constant 2 : index
      %c0_9 = arith.constant 0 : index
      %26 = vector.load %arg7[%c0_8, %c2, %c0_9] : memref<1x4x256xf32, #tpu.memory_space<vmem>>, vector<1x1x256xf32>
      %27 = vector.shape_cast %26 : vector<1x1x256xf32> to vector<1x256xf32>
      %c0_10 = arith.constant 0 : index
      %c3 = arith.constant 3 : index
      %c0_11 = arith.constant 0 : index
      %28 = vector.load %arg7[%c0_10, %c3, %c0_11] : memref<1x4x256xf32, #tpu.memory_space<vmem>>, vector<1x1x256xf32>
      %29 = vector.shape_cast %28 : vector<1x1x256xf32> to vector<1x256xf32>
      %c0_12 = arith.constant 0 : index
      %c0_13 = arith.constant 0 : index
      %c0_14 = arith.constant 0 : index
      %30 = vector.load %arg8[%c0_12, %c0_13, %c0_14] : memref<1x1x256xi32, #tpu.memory_space<vmem>>, vector<1x1x256xi32>
      %31 = vector.shape_cast %30 : vector<1x1x256xi32> to vector<1x256xi32>
      %32 = vector.broadcast %21 : i32 to vector<1x256xi32>
      %33 = arith.subi %31, %32 : vector<1x256xi32>
      %c1_i32 = arith.constant 1 : i32
      %34 = vector.broadcast %c1_i32 : i32 to vector<1x256xi32>
      %35 = arith.addi %33, %34 : vector<1x256xi32>
      %c16_i32 = arith.constant 16 : i32
      %36 = vector.broadcast %c16_i32 : i32 to vector<1x256xi32>
      %37 = arith.addi %33, %36 : vector<1x256xi32>
      %c16_i32_15 = arith.constant 16 : i32
      %38 = vector.broadcast %c16_i32_15 : i32 to vector<1x256xi32>
      %39 = arith.addi %33, %38 : vector<1x256xi32>
      %c1_i32_16 = arith.constant 1 : i32
      %40 = vector.broadcast %c1_i32_16 : i32 to vector<1x256xi32>
      %41 = arith.addi %39, %40 : vector<1x256xi32>
      %42 = tpu.iota {dimensions = array<i32: 0>} : vector<256x256xi32>
      %43 = vector.broadcast %33 : vector<1x256xi32> to vector<256x256xi32>
      %44 = arith.cmpi eq, %42, %43 : vector<256x256xi32>
      %45 = vector.broadcast %35 : vector<1x256xi32> to vector<256x256xi32>
      %46 = arith.cmpi eq, %42, %45 : vector<256x256xi32>
      %47 = vector.broadcast %37 : vector<1x256xi32> to vector<256x256xi32>
      %48 = arith.cmpi eq, %42, %47 : vector<256x256xi32>
      %49 = vector.broadcast %41 : vector<1x256xi32> to vector<256x256xi32>
      %50 = arith.cmpi eq, %42, %49 : vector<256x256xi32>
      %cst = arith.constant 0.000000e+00 : f32
      %51 = vector.shape_cast %29 : vector<1x256xf32> to vector<1x256xf32>
      %52 = vector.broadcast %51 : vector<1x256xf32> to vector<256x256xf32>
      %53 = vector.broadcast %cst : f32 to vector<256x256xf32>
      %54 = arith.select %50, %52, %53 : vector<256x256xi1>, vector<256x256xf32>
      %55 = vector.shape_cast %27 : vector<1x256xf32> to vector<1x256xf32>
      %56 = vector.broadcast %55 : vector<1x256xf32> to vector<256x256xf32>
      %57 = arith.select %48, %56, %54 : vector<256x256xi1>, vector<256x256xf32>
      %58 = vector.shape_cast %25 : vector<1x256xf32> to vector<1x256xf32>
      %59 = vector.broadcast %58 : vector<1x256xf32> to vector<256x256xf32>
      %60 = arith.select %46, %59, %57 : vector<256x256xi1>, vector<256x256xf32>
      %61 = vector.shape_cast %23 : vector<1x256xf32> to vector<1x256xf32>
      %62 = vector.broadcast %61 : vector<1x256xf32> to vector<256x256xf32>
      %63 = arith.select %44, %62, %60 : vector<256x256xi1>, vector<256x256xf32>
      %c0_17 = arith.constant 0 : index
      %c0_18 = arith.constant 0 : index
      %64 = vector.load %arg10[%c0_17, %c0_18] : memref<4x256xf32, #tpu.memory_space<vmem>>, vector<4x256xf32>
      %c0_19 = arith.constant 0 : index
      %c0_20 = arith.constant 0 : index
      %c0_21 = arith.constant 0 : index
      %65 = vector.load %arg6[%c0_19, %c0_20, %c0_21] : memref<1x4x256xbf16, #tpu.memory_space<vmem>>, vector<1x4x256xbf16>
      %66 = vector.shape_cast %65 : vector<1x4x256xbf16> to vector<4x256xbf16>
      %67 = arith.truncf %63 : vector<256x256xf32> to vector<256x256xbf16>
      %cst_22 = arith.constant dense<0.000000e+00> : vector<4x256xf32>
      %68 = tpu.matmul %66, %67, %cst_22 {dimension_numbers = #tpu.dot_dimension_numbers<[1], [0], [0], [1], [0, 0, 1, 1], [], []>} : vector<4x256xbf16>, vector<256x256xbf16>, vector<4x256xf32> -> vector<4x256xf32>
      %69 = arith.addf %64, %68 : vector<4x256xf32>
      %c0_23 = arith.constant 0 : index
      %c0_24 = arith.constant 0 : index
      %70 = vector.load %arg10[%c0_23, %c0_24] : memref<4x256xf32, #tpu.memory_space<vmem>>, vector<4x256xf32>
      tpu.vector_store %arg10[%c0_23, %c0_24], %69 {strides = array<i32>} : memref<4x256xf32, #tpu.memory_space<vmem>>, vector<4x256xf32>,
    } else {
    }
    %c0_i32_2 = arith.constant 0 : i32
    %18 = arith.cmpi eq, %arg2, %c0_i32_2 : i32
    %19 = arith.extui %18 : i1 to i32
    %c0_i32_3 = arith.constant 0 : i32
    %20 = arith.cmpi ne, %19, %c0_i32_3 : i32
    scf.if %20 {
      %c0 = arith.constant 0 : index
      %c0_4 = arith.constant 0 : index
      %21 = vector.load %arg10[%c0, %c0_4] : memref<4x256xf32, #tpu.memory_space<vmem>>, vector<4x256xf32>
      %c0_5 = arith.constant 0 : index
      %c0_6 = arith.constant 0 : index
      %c0_7 = arith.constant 0 : index
      %22 = vector.load %arg9[%c0_5, %c0_6, %c0_7] : memref<1x4x256xf32, #tpu.memory_space<vmem>>, vector<1x4x256xf32>
      %23 = vector.shape_cast %22 : vector<1x4x256xf32> to vector<4x256xf32>
      %24 = vector.shape_cast %21 : vector<4x256xf32> to vector<1x4x256xf32>
      tpu.vector_store %arg9[%c0_5, %c0_6, %c0_7], %24 {strides = array<i32>} : memref<1x4x256xf32, #tpu.memory_space<vmem>>, vector<1x4x256xf32>,
    } else {
    }
    return
  }
  func.func @transform_0(%arg0: i32, %arg1: i32, %arg2: i32, %arg3: memref<2x1xi32, #tpu.memory_space<smem>>, %arg4: memref<2x1xi32, #tpu.memory_space<smem>>, %arg5: memref<2x1xi32, #tpu.memory_space<smem>>) -> (i32, i32, i32) {
    %0 = arith.index_cast %arg0 : i32 to index
    %1 = arith.index_cast %arg1 : i32 to index
    %2 = memref.load %arg3[%0, %1] : memref<2x1xi32, #tpu.memory_space<smem>>
    %3 = arith.addi %2, %arg2 : i32
    %c0_i32 = arith.constant 0 : i32
    %c0_i32_0 = arith.constant 0 : i32
    return %arg0, %c0_i32, %3 : i32, i32, i32
  }
  func.func @transform_1(%arg0: i32, %arg1: i32, %arg2: i32, %arg3: memref<2x1xi32, #tpu.memory_space<smem>>, %arg4: memref<2x1xi32, #tpu.memory_space<smem>>, %arg5: memref<2x1xi32, #tpu.memory_space<smem>>) -> (i32, i32, i32) {
    %c0_i32 = arith.constant 0 : i32
    %c0_i32_0 = arith.constant 0 : i32
    return %arg0, %c0_i32, %arg1 : i32, i32, i32
  }
  func.func @transform_2(%arg0: i32, %arg1: i32, %arg2: i32, %arg3: memref<2x1xi32, #tpu.memory_space<smem>>, %arg4: memref<2x1xi32, #tpu.memory_space<smem>>, %arg5: memref<2x1xi32, #tpu.memory_space<smem>>) -> (i32, i32, i32) {
    %c0_i32 = arith.constant 0 : i32
    %c0_i32_0 = arith.constant 0 : i32
    return %arg0, %c0_i32, %arg1 : i32, i32, i32
  }
  func.func @transform_3(%arg0: i32, %arg1: i32, %arg2: i32, %arg3: memref<2x1xi32, #tpu.memory_space<smem>>, %arg4: memref<2x1xi32, #tpu.memory_space<smem>>, %arg5: memref<2x1xi32, #tpu.memory_space<smem>>) -> (i32, i32, i32) {
    %c0_i32 = arith.constant 0 : i32
    %c0_i32_0 = arith.constant 0 : i32
    return %arg0, %c0_i32, %arg1 : i32, i32, i32
  }
}

</mosaic_0001>

<bundles_post_ra>
// kernel: tpu_custom_call.1
= control target key start
LH: loop header
LB: loop body
LE: loop exit
PB: predicated region body
PF: predicated region fallthrough
CT: control target
= control target key end

     0   :  { %s2537_s0 = inlined_call_operand.vmem [shape: s32[2,1], index: 0, kind: input, shape index: {}]   ;;  %s2538_s3 = inlined_call_operand.vmem [shape: bf16[2,4,256], index: 3, kind: input, shape index: {}]   ;;  %s2539_s4 = inlined_call_operand.vmem [shape: f32[2,4,256], index: 4, kind: input, shape index: {}]   ;;  %s2540_s5 = inlined_call_operand.vmem [shape: s32[2,1,256], index: 5, kind: input, shape index: {}]   ;;  %s2541_s6 = inlined_call_operand.hbm [shape: f32[2,4,256], index: 6, kind: output, shape index: {}]   ;;  %s2542_s1 = inlined_call_operand.vmem [shape: s32[2,1], index: 1, kind: input, shape index: {}]   ;;  %s2543_s2 = inlined_call_operand.vmem [shape: s32[2,1], index: 2, kind: input, shape index: {}]  }
   0x1   :  { %s11_s23 = sshll.u32 %s2537_s0, 4  ;;  %s15_s26 = sshll.u32 %s2542_s1, 4  ;;  %s12_s23 = int_to_ptr.vmem [resolvable:$true] %s11_s23  ;;  %s16_s26 = int_to_ptr.vmem [resolvable:$true] %s15_s26 }
   0x2   :  { %s1326_s27 = scalar_lea.vmem %s12_s23, 32  ;;  %p1331_p1 = scmp.lt.s32.totalorder %s12_s23, %s12_s23 }
   0x3   :  { %p1327_p0 = scmp.ne.s32.totalorder %s12_s23, %s1326_s27  ;;  %p1332_p2 = scmp.lt.s32.totalorder %s1326_s27, %s1326_s27 }
   0x5   :  { %p1333_p3 = por %p1332_p2, %p1331_p1 }
   0x7   :  { %p1334_p4 = pnand %p1333_p3, %p1327_p0 }
   0x9   :  { %1337 = shalt.err (!%p1334_p4)  }
   0xa   :  { %s1444_s28 = smov [#allocation4]   ;;  %s1338_s29 = scalar_lea.vmem %s16_s26, 32 }
   0xb   :  { %14 = dma.vmem_to_smem %s12_s23, 32, %s1444_s28, [#allocation3] }
   0xc   :  { %p1339_p5 = scmp.ne.s32.totalorder %s16_s26, %s1338_s29  ;;  %p1343_p6 = scmp.lt.s32.totalorder %s16_s26, %s16_s26 }
   0xd   :  { %p1344_p7 = scmp.lt.s32.totalorder %s1338_s29, %s1338_s29 }
   0xf   :  { %p1345_p8 = por %p1344_p7, %p1343_p6 }
  0x11   :  { %p1346_p9 = pnand %p1345_p8, %p1339_p5 }
  0x13   :  { %1349 = shalt.err (!%p1346_p9)  }
  0x14   :  { %s1445_s0 = smov [#allocation5]   ;;  %s19_s7 = sshll.u32 %s2543_s2, 4  ;;  %s20_s7 = int_to_ptr.vmem [resolvable:$true] %s19_s7 }
  0x15   :  { %18 = dma.vmem_to_smem %s16_s26, 32, %s1445_s0, [#allocation3] }
  0x16   :  { %s1350_s8 = scalar_lea.vmem %s20_s7, 32  ;;  %p1355_p11 = scmp.lt.s32.totalorder %s20_s7, %s20_s7 }
  0x17   :  { %p1351_p10 = scmp.ne.s32.totalorder %s20_s7, %s1350_s8  ;;  %p1356_p12 = scmp.lt.s32.totalorder %s1350_s8, %s1350_s8 }
  0x19   :  { %p1357_p13 = por %p1356_p12, %p1355_p11 }
  0x1b   :  { %p1358_p0 = pnand %p1357_p13, %p1351_p10 }
  0x1d   :  { %1361 = shalt.err (!%p1358_p0)  }
  0x1e   :  { %s1446_s9 = smov [#allocation6]  }
  0x1f   :  { %22 = dma.vmem_to_smem %s20_s7, 32, %s1446_s9, [#allocation3] }
  0x20   :  { %1414 = dma.done.wait [#allocation3], 96 }
  0x21   :  { %1415 = vsyncadd [#allocation3], 4294967200 }
  0x22   :  { %24 = sfence }
  0x23   :  { %25 = vsyncpa [#allocation8], 0 }
  0x24   :  { %27 = vsyncpa [#allocation8 + $0x1], 0  ;;  %s1493_s10 = smov 0   ;;  %s1495_s11 = smov 0  }
  0x25   :  { %s1497_s2 = smov 0   ;;  %s1499_s12 = smov 0  }
  0x26   :  { %s1501_s13 = smov 0   ;;  %s1503_s14 = smov 0  }
  0x27 LB: > { %2547 = sst [smem:[#allocation11_spill]] %s1438_s13  ;;  %s1239_s15 = sadd.s32 4294967295, %s1442_s14   ;;  %s1442_s14 = sphi %s1503_s14, %s33_s14   ;;  %s1438_s13 = sphi %s1501_s13, %s2553_s13   ;;  %s1434_s12 = sphi %s1499_s12, %s2552_s12   ;;  %s1430_s2 = sphi %s1497_s2, %s2556_s2   ;;  %s1426_s11 = sphi %s1495_s11, %s2555_s11   ;;  %s1422_s10 = sphi %s1493_s10, %s2554_s10  }
  0x28   : > { %s1240_s16 = sadd.s32 4294967294, %s1442_s14   ;;  %s52_s17 = sadd.s32 1, %s1438_s13 }
  0x29   : > { %s163_s18 = sadd.s32 1, %s1430_s2  ;;  %p54_p1 = scmp.ge.s32.totalorder %s52_s17, 2 }
  0x2a   : > { %p173_p2 = scmp.ne.s32.totalorder %s1430_s2, %s1426_s11  ;;  %p174_p3 = scmp.eq.s32.totalorder %s1239_s15, 1 }
  0x2b   : > { %p179_p4 = scmp.ne.s32.totalorder %s1426_s11, %s1422_s10  ;;  %s2558_s17 = smov (%p54_p1, %s52_s17), 0 }
  0x2c   : > { %2548 = sst [smem:[#allocation12_spill]] %s2558_s17  ;;  %p1533_p5 = por %p174_p3, %p173_p2 }
  0x2d   : > { %p180_p6 = scmp.eq.s32.totalorder %s1240_s16, 1  ;;  %s158_s20 = ssub.s32 %s1438_s13, %s2558_s17 }
  0x2e   : > { %p1245_p7 = scmp.ge.s32.totalorder %s1442_s14, 1  ;;  %p161_p8 = scmp.eq.s32.totalorder %s158_s20, 0 }
  0x2f   : > { %p1540_p9 = por %p180_p6, %p179_p4  ;;  %p254_p10 = scmp.lt.s32.totalorder %s1442_s14, 3 }
  0x30   : > { %s1546_s22 = scalar_select %p161_p8, %s1430_s2, %s163_s18  }
  0x31   : > { %p255_p11 = pnand %p1245_p7, %p254_p10 }
  0x32   : > { %s2544_s23 = sand.u32 (!%p255_p11), 1, %s1426_s11   ;;  %s1550_s24 = sshll.u32 (!%p255_p11), %s1434_s12, 7  ;;  %v1447_v0 = vmov (!%p255_p11), 0.0  }
  0x33   : > { %258 = sbr.rel (%p255_p11) target bundleno = 468 (0x1d4), region = 32  ;;  %s1554_s25 = sshll.u32 (!%p255_p11), %s2544_s23, 3  ;;  %360 = vst [vmem:[#allocation2] sm:$0xff] (!%p255_p11), %v1447_v0 }
  0x34   : > { %s315_s26 = sld [smem:[#allocation4 + %s1550_s24]] (!%p255_p11)  ;;  %p318_p12 = scmp.lt.s32.totalorder (!%p255_p11), %s1434_s12, 1 }
  0x35   : > { %s368_s27 = sld [smem:[#allocation4 + %s1550_s24]] (!%p255_p11) }
  0x36   : > { %s370_s28 = sld [smem:[#allocation5 + %s1550_s24]] (!%p255_p11) }
  0x37   : > { %s372_s29 = sld [smem:[#allocation6 + %s1550_s24]] (!%p255_p11) }
  0x3a   : > { %s2560_s12 = smov (!%p318_p12, %s1434_s12), 1  ;;  %s1248_s30 = sshll.u32 %s315_s26, 1 }
  0x3b   : > { %s1249_s0 = sshll.u32 %s2560_s12, 1  ;;  %s1265_s1 = sshll.u32 %s2560_s12, 3 }
  0x3c   : > { %s344_s9 = scalar_lea.vmem %s2539_s4, %s1265_s1  ;;  %p320_p13 = scmp.lt.s32.totalorder %s1248_s30, 1 }
  0x3d   : > { %s353_s18 = scalar_lea.vmem %s2540_s5, %s1249_s0  ;;  %p371_p0 = scmp.ge.s32.totalorder %s368_s27, %s370_s28 }
  0x3e   : > { %s2562_s30 = smov (!%p320_p13, %s1248_s30), 1  ;;  %p373_p1 = scmp.le.s32.totalorder %s368_s27, %s372_s29 }
  0x3f   : > { %s323_s20 = sadd.s32 %s1249_s0, %s2562_s30  ;;  %s307_s26 = scalar_lea.vmem [#allocation7], %s1554_s25 }
  0x40   : > { %s1250_s23 = sshll.u32 %s323_s20, 1  ;;  %p374_p2 = pnand %p373_p1, %p371_p0 }
  0x41   : > { %s1571_s12 = scalar_lea.vmem %s2538_s3, %s1250_s23  ;;  %s1255_s7 = sshll.u32 (!%p374_p2), %s368_s27, 8  ;;  %v386_v1 = vld [vmem:[%s353_s18] sm:$0x3] (!%p374_p2)  ;;  %v392_v2 = vlaneseq (!%p374_p2)  ;;  %v1257_v8 = vld [vmem:[%s344_s9 + $0x2] ss:$4 sm:$0x3] (!%p374_p2) }
  0x42   : > { %377 = sbr.rel (%p374_p2) target bundleno = 443 (0x1bb), region = 40  ;;  %v387_v3 = vstv (!%p374_p2), %s1255_s7  ;;  %v379_v4 = vld [vmem:[%s344_s9] ss:$4 sm:$0x3] (!%p374_p2) }
  0x43   : > { %v1256_v5 = vld [vmem:[%s344_s9 + $0x1] ss:$4 sm:$0x3] (!%p374_p2)  ;;  %v388_v6 = vsub.s32 (!%p374_p2), %v386_v1, %v387_v3  ;;  %v1574_v7 = vshrl.u32 (!%p374_p2), %v392_v2, 7 }
  0x44   : > { %v1258_v9 = vld [vmem:[%s344_s9 + $0x3] ss:$4 sm:$0x3] (!%p374_p2) }
  0x45   : > { %v389_v10 = vadd.s32 (!%p374_p2), 1, %v388_v6  ;;  %v390_v11 = vadd.s32 (!%p374_p2), 16, %v388_v6  ;;  %v1577_v12 = vadd.s32 (!%p374_p2), 8, %v1574_v7  ;;  %v431_v13 = vsub.s32 (!%p374_p2), 1, %v1574_v7 }
  0x46   : > { %v427_v14 = vsub.s32 (!%p374_p2), 0, %v1574_v7  ;;  %v1582_v15 = vadd.s32 (!%p374_p2), 16, %v1574_v7  ;;  %v1585_v16 = vadd.s32 (!%p374_p2), 24, %v1574_v7  ;;  %v1588_v17 = vadd.s32 (!%p374_p2), 32, %v1574_v7 }
  0x47   : > { %v391_v18 = vadd.s32 (!%p374_p2), 1, %v390_v11  ;;  %v1590_v19 = vrot.slane (!%p374_p2), %v388_v6, %v431_v13  ;;  %v1592_v20 = vrot.slane (!%p374_p2), %v389_v10, %v431_v13  ;;  %v1594_v21 = vrot.slane (!%p374_p2), %v390_v11, %v431_v13 }
  0x48   : > { %v1596_v22 = vrot.slane (!%p374_p2), %v1258_v9, %v431_v13  ;;  %v1598_v23 = vrot.slane (!%p374_p2), %v1257_v8, %v431_v13  ;;  %v1600_v24 = vrot.slane (!%p374_p2), %v1256_v5, %v431_v13  ;;  %v1602_v25 = vrot.slane (!%p374_p2), %v379_v4, %v431_v13 }
  0x49   : > { %vm434_vm0 = vcmp.eq.s32.totalorder %v1574_v7, %v1590_v19  ;;  %vm436_vm1 = vcmp.eq.s32.totalorder %v1577_v12, %v1590_v19  ;;  %vm506_vm2 = vcmp.eq.s32.totalorder %v1574_v7, %v1592_v20  ;;  %vm508_vm3 = vcmp.eq.s32.totalorder %v1577_v12, %v1592_v20 }
  0x4a   : > { %vm578_vm4 = vcmp.eq.s32.totalorder %v1574_v7, %v1594_v21  ;;  %vm580_vm5 = vcmp.eq.s32.totalorder %v1577_v12, %v1594_v21  ;;  %v1616_v26 = vrot.slane %v391_v18, %v431_v13  ;;  %v1618_v27 = vrot.slane %v388_v6, %v427_v14 }
  0x4b   : > { %v1620_v28 = vrot.slane %v389_v10, %v427_v14  ;;  %v1622_v29 = vrot.slane %v390_v11, %v427_v14  ;;  %v1624_v30 = vrot.slane %v391_v18, %v427_v14  ;;  %v1626_v31 = vrot.slane %v1258_v9, %v427_v14 }
  0x4c   : > { %vm650_vm6 = vcmp.eq.s32.totalorder %v1574_v7, %v1616_v26  ;;  %vm652_vm7 = vcmp.eq.s32.totalorder %v1577_v12, %v1616_v26  ;;  %vm433_vm8 = vcmp.eq.s32.totalorder %v1574_v7, %v1618_v27  ;;  %vm435_vm9 = vcmp.eq.s32.totalorder %v1577_v12, %v1618_v27 }
  0x4d   : > { %v725_v32 = vsel %vm650_vm6, %v1596_v22, 0.0  ;;  %v727_v33 = vsel %vm652_vm7, %v1596_v22, 0.0  ;;  %vm505_vm10 = vcmp.eq.s32.totalorder %v1574_v7, %v1620_v28  ;;  %vm507_vm11 = vcmp.eq.s32.totalorder %v1577_v12, %v1620_v28 }
  0x4e   : > { %v800_v34 = vsel %vm578_vm4, %v1598_v23, %v725_v32  ;;  %v802_v35 = vsel %vm580_vm5, %v1598_v23, %v727_v33  ;;  %vm577_vm12 = vcmp.eq.s32.totalorder %v1574_v7, %v1622_v29  ;;  %vm579_vm13 = vcmp.eq.s32.totalorder %v1577_v12, %v1622_v29 }
  0x4f   : > { %v875_v36 = vsel %vm506_vm2, %v1600_v24, %v800_v34  ;;  %v877_v37 = vsel %vm508_vm3, %v1600_v24, %v802_v35  ;;  %vm649_vm14 = vcmp.eq.s32.totalorder %v1574_v7, %v1624_v30  ;;  %vm651_vm15 = vcmp.eq.s32.totalorder %v1577_v12, %v1624_v30 }
  0x50   : > { %v950_v38 = vsel %vm434_vm0, %v1602_v25, %v875_v36  ;;  %v952_v39 = vsel %vm436_vm1, %v1602_v25, %v877_v37  ;;  %v724_v40 = vsel %vm649_vm14, %v1626_v31, 0.0  ;;  %v726_v41 = vsel %vm651_vm15, %v1626_v31, 0.0 }
  0x51   : > { %v1016_v42 = vpack.c.bf16 %v952_v39, %v950_v38  ;;  %v1676_v43 = vrot.slane %v1257_v8, %v427_v14  ;;  %v1678_v44 = vrot.slane %v1256_v5, %v427_v14  ;;  %v1680_v45 = vrot.slane %v379_v4, %v427_v14 }
  0x52   : > { %vm438_vm2 = vcmp.eq.s32.totalorder %v1582_v15, %v1590_v19  ;;  %vm440_vm0 = vcmp.eq.s32.totalorder %v1585_v16, %v1590_v19  ;;  %vm510_vm1 = vcmp.eq.s32.totalorder %v1582_v15, %v1592_v20  ;;  %vm512_vm3 = vcmp.eq.s32.totalorder %v1585_v16, %v1592_v20 }
  0x53   : > { %1058 = vmatprep.subr.bf16.mxu0 %v1016_v42  ;;  %v799_v46 = vsel %vm577_vm12, %v1676_v43, %v724_v40  ;;  %v801_v47 = vsel %vm579_vm13, %v1676_v43, %v726_v41  ;;  %vm582_vm4 = vcmp.eq.s32.totalorder %v1582_v15, %v1594_v21  ;;  %vm584_vm5 = vcmp.eq.s32.totalorder %v1585_v16, %v1594_v21 }
  0x54   : > { %v874_v48 = vsel %vm505_vm10, %v1678_v44, %v799_v46  ;;  %v876_v49 = vsel %vm507_vm11, %v1678_v44, %v801_v47  ;;  %vm654_vm6 = vcmp.eq.s32.totalorder %v1582_v15, %v1616_v26  ;;  %vm656_vm7 = vcmp.eq.s32.totalorder %v1585_v16, %v1616_v26 }
  0x55   : > { %v949_v50 = vsel %vm433_vm8, %v1680_v45, %v874_v48  ;;  %v951_v51 = vsel %vm435_vm9, %v1680_v45, %v876_v49  ;;  %v729_v52 = vsel %vm654_vm6, %v1596_v22, 0.0  ;;  %v731_v53 = vsel %vm656_vm7, %v1596_v22, 0.0 }
  0x56   : > { %v1015_v54 = vpack.c.bf16 %v951_v51, %v949_v50  ;;  %v804_v55 = vsel %vm582_vm4, %v1598_v23, %v729_v52  ;;  %v806_v56 = vsel %vm584_vm5, %v1598_v23, %v731_v53  ;;  %vm437_vm10 = vcmp.eq.s32.totalorder %v1582_v15, %v1618_v27 }
  0x57   : > { %v879_v57 = vsel %vm510_vm1, %v1600_v24, %v804_v55  ;;  %v881_v58 = vsel %vm512_vm3, %v1600_v24, %v806_v56  ;;  %vm439_vm8 = vcmp.eq.s32.totalorder %v1585_v16, %v1618_v27  ;;  %vm509_vm9 = vcmp.eq.s32.totalorder %v1582_v15, %v1620_v28 }
  0x58   : > { %1059 = vmatpush1.bf16.msra.mxu0 %v1015_v54  ;;  %v954_v59 = vsel %vm438_vm2, %v1602_v25, %v879_v57  ;;  %v956_v60 = vsel %vm440_vm0, %v1602_v25, %v881_v58  ;;  %vm511_vm11 = vcmp.eq.s32.totalorder %v1585_v16, %v1620_v28  ;;  %vm581_vm12 = vcmp.eq.s32.totalorder %v1582_v15, %v1622_v29 }
  0x59   : > { %v1018_v61 = vpack.c.bf16 %v956_v60, %v954_v59  ;;  %vm583_vm13 = vcmp.eq.s32.totalorder %v1585_v16, %v1622_v29  ;;  %vm653_vm14 = vcmp.eq.s32.totalorder %v1582_v15, %v1624_v30  ;;  %vm655_vm15 = vcmp.eq.s32.totalorder %v1585_v16, %v1624_v30 }
  0x5a   : > { %v728_v62 = vsel %vm653_vm14, %v1626_v31, 0.0  ;;  %v730_v63 = vsel %vm655_vm15, %v1626_v31, 0.0  ;;  %v398_v0 = vadd.s32 40, %v1574_v7  ;;  %vm442_vm2 = vcmp.eq.s32.totalorder %v1588_v17, %v1590_v19 }
  0x5b   : > { %1060 = vmatprep.subr.bf16.mxu0 %v1018_v61  ;;  %v803_v1 = vsel %vm581_vm12, %v1676_v43, %v728_v62  ;;  %v805_v2 = vsel %vm583_vm13, %v1676_v43, %v730_v63  ;;  %vm514_vm0 = vcmp.eq.s32.totalorder %v1588_v17, %v1592_v20  ;;  %vm586_vm1 = vcmp.eq.s32.totalorder %v1588_v17, %v1594_v21 }
  0x5c   : > { %v878_v3 = vsel %vm509_vm9, %v1678_v44, %v803_v1  ;;  %v880_v4 = vsel %vm511_vm11, %v1678_v44, %v805_v2  ;;  %vm444_vm3 = vcmp.eq.s32.totalorder %v398_v0, %v1590_v19  ;;  %vm516_vm4 = vcmp.eq.s32.totalorder %v398_v0, %v1592_v20 }
  0x5d   : > { %v953_v5 = vsel %vm437_vm10, %v1680_v45, %v878_v3  ;;  %v955_v6 = vsel %vm439_vm8, %v1680_v45, %v880_v4  ;;  %vm588_vm5 = vcmp.eq.s32.totalorder %v398_v0, %v1594_v21  ;;  %vm658_vm6 = vcmp.eq.s32.totalorder %v1588_v17, %v1616_v26 }
  0x5e   : > { %v1017_v8 = vpack.c.bf16 %v955_v6, %v953_v5  ;;  %vm660_vm7 = vcmp.eq.s32.totalorder %v398_v0, %v1616_v26  ;;  %v733_v9 = vsel %vm658_vm6, %v1596_v22, 0.0  ;;  %vm441_vm9 = vcmp.eq.s32.totalorder %v1588_v17, %v1618_v27 }
  0x5f   : > { %v735_v10 = vsel %vm660_vm7, %v1596_v22, 0.0  ;;  %v808_v11 = vsel %vm586_vm1, %v1598_v23, %v733_v9  ;;  %vm443_vm10 = vcmp.eq.s32.totalorder %v398_v0, %v1618_v27  ;;  %vm513_vm8 = vcmp.eq.s32.totalorder %v1588_v17, %v1620_v28 }
  0x60   : > { %1061 = vmatpush1.bf16.msra.mxu0 %v1017_v8  ;;  %v810_v12 = vsel %vm588_vm5, %v1598_v23, %v735_v10  ;;  %v883_v13 = vsel %vm514_vm0, %v1600_v24, %v808_v11  ;;  %vm515_vm11 = vcmp.eq.s32.totalorder %v398_v0, %v1620_v28  ;;  %vm585_vm12 = vcmp.eq.s32.totalorder %v1588_v17, %v1622_v29 }
  0x61   : > { %v885_v14 = vsel %vm516_vm4, %v1600_v24, %v810_v12  ;;  %v958_v15 = vsel %vm442_vm2, %v1602_v25, %v883_v13  ;;  %vm587_vm13 = vcmp.eq.s32.totalorder %v398_v0, %v1622_v29  ;;  %vm657_vm14 = vcmp.eq.s32.totalorder %v1588_v17, %v1624_v30 }
  0x62   : > { %v960_v16 = vsel %vm444_vm3, %v1602_v25, %v885_v14  ;;  %vm659_vm15 = vcmp.eq.s32.totalorder %v398_v0, %v1624_v30  ;;  %v732_v18 = vsel %vm657_vm14, %v1626_v31, 0.0  ;;  %v399_v32 = vadd.s32 48, %v1574_v7 }
  0x63   : > { %v1020_v33 = vpack.c.bf16 %v960_v16, %v958_v15  ;;  %v734_v34 = vsel %vm659_vm15, %v1626_v31, 0.0  ;;  %v807_v35 = vsel %vm585_vm12, %v1676_v43, %v732_v18  ;;  %v400_v36 = vadd.s32 56, %v1574_v7 }
  0x64   : > { %v809_v37 = vsel %vm587_vm13, %v1676_v43, %v734_v34  ;;  %v882_v38 = vsel %vm513_vm8, %v1678_v44, %v807_v35  ;;  %vm446_vm2 = vcmp.eq.s32.totalorder %v399_v32, %v1590_v19  ;;  %vm518_vm0 = vcmp.eq.s32.totalorder %v399_v32, %v1592_v20 }
  0x65   : > { %1062 = vmatprep.subr.bf16.mxu0 %v1020_v33  ;;  %v884_v39 = vsel %vm515_vm11, %v1678_v44, %v809_v37  ;;  %v957_v40 = vsel %vm441_vm9, %v1680_v45, %v882_v38  ;;  %vm448_vm1 = vcmp.eq.s32.totalorder %v400_v36, %v1590_v19  ;;  %vm520_vm3 = vcmp.eq.s32.totalorder %v400_v36, %v1592_v20 }
  0x66   : > { %v959_v41 = vsel %vm443_vm10, %v1680_v45, %v884_v39  ;;  %vm590_vm4 = vcmp.eq.s32.totalorder %v399_v32, %v1594_v21  ;;  %vm592_vm5 = vcmp.eq.s32.totalorder %v400_v36, %v1594_v21  ;;  %vm662_vm6 = vcmp.eq.s32.totalorder %v399_v32, %v1616_v26 }
  0x67   : > { %v1019_v42 = vpack.c.bf16 %v959_v41, %v957_v40  ;;  %vm664_vm7 = vcmp.eq.s32.totalorder %v400_v36, %v1616_v26  ;;  %v737_v17 = vsel %vm662_vm6, %v1596_v22, 0.0  ;;  %vm445_vm9 = vcmp.eq.s32.totalorder %v399_v32, %v1618_v27 }
  0x68   : > { %v739_v46 = vsel %vm664_vm7, %v1596_v22, 0.0  ;;  %v812_v47 = vsel %vm590_vm4, %v1598_v23, %v737_v17  ;;  %vm447_vm8 = vcmp.eq.s32.totalorder %v400_v36, %v1618_v27  ;;  %vm517_vm10 = vcmp.eq.s32.totalorder %v399_v32, %v1620_v28 }
  0x69   : > { %1063 = vmatpush1.bf16.msra.mxu0 %v1019_v42  ;;  %v814_v48 = vsel %vm592_vm5, %v1598_v23, %v739_v46  ;;  %v887_v49 = vsel %vm518_vm0, %v1600_v24, %v812_v47  ;;  %vm519_vm11 = vcmp.eq.s32.totalorder %v400_v36, %v1620_v28  ;;  %vm589_vm12 = vcmp.eq.s32.totalorder %v399_v32, %v1622_v29 }
  0x6a   : > { %v889_v50 = vsel %vm520_vm3, %v1600_v24, %v814_v48  ;;  %v962_v51 = vsel %vm446_vm2, %v1602_v25, %v887_v49  ;;  %vm591_vm13 = vcmp.eq.s32.totalorder %v400_v36, %v1622_v29  ;;  %vm661_vm14 = vcmp.eq.s32.totalorder %v399_v32, %v1624_v30 }
  0x6b   : > { %v964_v52 = vsel %vm448_vm1, %v1602_v25, %v889_v50  ;;  %vm663_vm15 = vcmp.eq.s32.totalorder %v400_v36, %v1624_v30  ;;  %v736_v53 = vsel %vm661_vm14, %v1626_v31, 0.0  ;;  %v401_v54 = vadd.s32 64, %v1574_v7 }
  0x6c   : > { %v1022_v55 = vpack.c.bf16 %v964_v52, %v962_v51  ;;  %v738_v56 = vsel %vm663_vm15, %v1626_v31, 0.0  ;;  %v811_v57 = vsel %vm589_vm12, %v1676_v43, %v736_v53  ;;  %v402_v58 = vadd.s32 72, %v1574_v7 }
  0x6d   : > { %v813_v59 = vsel %vm591_vm13, %v1676_v43, %v738_v56  ;;  %v886_v60 = vsel %vm517_vm10, %v1678_v44, %v811_v57  ;;  %vm450_vm2 = vcmp.eq.s32.totalorder %v401_v54, %v1590_v19  ;;  %vm522_vm0 = vcmp.eq.s32.totalorder %v401_v54, %v1592_v20 }
  0x6e   : > { %1064 = vmatprep.subr.bf16.mxu0 %v1022_v55  ;;  %v888_v61 = vsel %vm519_vm11, %v1678_v44, %v813_v59  ;;  %v961_v62 = vsel %vm445_vm9, %v1680_v45, %v886_v60  ;;  %vm452_vm1 = vcmp.eq.s32.totalorder %v402_v58, %v1590_v19  ;;  %vm524_vm3 = vcmp.eq.s32.totalorder %v402_v58, %v1592_v20 }
  0x6f   : > { %v963_v63 = vsel %vm447_vm8, %v1680_v45, %v888_v61  ;;  %vm594_vm4 = vcmp.eq.s32.totalorder %v401_v54, %v1594_v21  ;;  %vm596_vm5 = vcmp.eq.s32.totalorder %v402_v58, %v1594_v21  ;;  %vm666_vm6 = vcmp.eq.s32.totalorder %v401_v54, %v1616_v26 }
  0x70   : > { %v1021_v0 = vpack.c.bf16 %v963_v63, %v961_v62  ;;  %vm668_vm7 = vcmp.eq.s32.totalorder %v402_v58, %v1616_v26  ;;  %v741_v1 = vsel %vm666_vm6, %v1596_v22, 0.0  ;;  %vm449_vm9 = vcmp.eq.s32.totalorder %v401_v54, %v1618_v27 }
  0x71   : > { %v743_v2 = vsel %vm668_vm7, %v1596_v22, 0.0  ;;  %v816_v3 = vsel %vm594_vm4, %v1598_v23, %v741_v1  ;;  %vm451_vm10 = vcmp.eq.s32.totalorder %v402_v58, %v1618_v27  ;;  %vm521_vm8 = vcmp.eq.s32.totalorder %v401_v54, %v1620_v28 }
  0x72   : > { %1065 = vmatpush1.bf16.msra.mxu0 %v1021_v0  ;;  %v818_v4 = vsel %vm596_vm5, %v1598_v23, %v743_v2  ;;  %v891_v5 = vsel %vm522_vm0, %v1600_v24, %v816_v3  ;;  %vm523_vm11 = vcmp.eq.s32.totalorder %v402_v58, %v1620_v28  ;;  %vm593_vm12 = vcmp.eq.s32.totalorder %v401_v54, %v1622_v29 }
  0x73   : > { %v893_v6 = vsel %vm524_vm3, %v1600_v24, %v818_v4  ;;  %v966_v8 = vsel %vm450_vm2, %v1602_v25, %v891_v5  ;;  %vm595_vm13 = vcmp.eq.s32.totalorder %v402_v58, %v1622_v29  ;;  %vm665_vm14 = vcmp.eq.s32.totalorder %v401_v54, %v1624_v30 }
  0x74   : > { %v968_v9 = vsel %vm452_vm1, %v1602_v25, %v893_v6  ;;  %vm667_vm15 = vcmp.eq.s32.totalorder %v402_v58, %v1624_v30  ;;  %v740_v10 = vsel %vm665_vm14, %v1626_v31, 0.0  ;;  %v403_v11 = vadd.s32 80, %v1574_v7 }
  0x75   : > { %v1024_v12 = vpack.c.bf16 %v968_v9, %v966_v8  ;;  %v742_v13 = vsel %vm667_vm15, %v1626_v31, 0.0  ;;  %v815_v14 = vsel %vm593_vm12, %v1676_v43, %v740_v10  ;;  %v404_v15 = vadd.s32 88, %v1574_v7 }
  0x76   : > { %v817_v16 = vsel %vm595_vm13, %v1676_v43, %v742_v13  ;;  %v890_v18 = vsel %vm521_vm8, %v1678_v44, %v815_v14  ;;  %vm454_vm2 = vcmp.eq.s32.totalorder %v403_v11, %v1590_v19  ;;  %vm526_vm0 = vcmp.eq.s32.totalorder %v403_v11, %v1592_v20 }
  0x77   : > { %1066 = vmatprep.subr.bf16.mxu0 %v1024_v12  ;;  %v892_v32 = vsel %vm523_vm11, %v1678_v44, %v817_v16  ;;  %v965_v33 = vsel %vm449_vm9, %v1680_v45, %v890_v18  ;;  %vm456_vm1 = vcmp.eq.s32.totalorder %v404_v15, %v1590_v19  ;;  %vm528_vm3 = vcmp.eq.s32.totalorder %v404_v15, %v1592_v20 }
  0x78   : > { %v967_v34 = vsel %vm451_vm10, %v1680_v45, %v892_v32  ;;  %vm598_vm4 = vcmp.eq.s32.totalorder %v403_v11, %v1594_v21  ;;  %vm600_vm5 = vcmp.eq.s32.totalorder %v404_v15, %v1594_v21  ;;  %vm670_vm6 = vcmp.eq.s32.totalorder %v403_v11, %v1616_v26 }
  0x79   : > { %v1023_v35 = vpack.c.bf16 %v967_v34, %v965_v33  ;;  %vm672_vm7 = vcmp.eq.s32.totalorder %v404_v15, %v1616_v26  ;;  %v745_v36 = vsel %vm670_vm6, %v1596_v22, 0.0  ;;  %vm453_vm9 = vcmp.eq.s32.totalorder %v403_v11, %v1618_v27 }
  0x7a   : > { %v747_v37 = vsel %vm672_vm7, %v1596_v22, 0.0  ;;  %v820_v38 = vsel %vm598_vm4, %v1598_v23, %v745_v36  ;;  %vm455_vm8 = vcmp.eq.s32.totalorder %v404_v15, %v1618_v27  ;;  %vm525_vm10 = vcmp.eq.s32.totalorder %v403_v11, %v1620_v28 }
  0x7b   : > { %1067 = vmatpush1.bf16.msra.mxu0 %v1023_v35  ;;  %v822_v39 = vsel %vm600_vm5, %v1598_v23, %v747_v37  ;;  %v895_v40 = vsel %vm526_vm0, %v1600_v24, %v820_v38  ;;  %vm527_vm11 = vcmp.eq.s32.totalorder %v404_v15, %v1620_v28  ;;  %vm597_vm12 = vcmp.eq.s32.totalorder %v403_v11, %v1622_v29 }
  0x7c   : > { %v897_v41 = vsel %vm528_vm3, %v1600_v24, %v822_v39  ;;  %v970_v42 = vsel %vm454_vm2, %v1602_v25, %v895_v40  ;;  %vm599_vm13 = vcmp.eq.s32.totalorder %v404_v15, %v1622_v29  ;;  %vm669_vm14 = vcmp.eq.s32.totalorder %v403_v11, %v1624_v30 }
  0x7d   : > { %v972_v17 = vsel %vm456_vm1, %v1602_v25, %v897_v41  ;;  %vm671_vm15 = vcmp.eq.s32.totalorder %v404_v15, %v1624_v30  ;;  %v744_v46 = vsel %vm669_vm14, %v1626_v31, 0.0  ;;  %v405_v47 = vadd.s32 96, %v1574_v7 }
  0x7e   : > { %v1026_v48 = vpack.c.bf16 %v972_v17, %v970_v42  ;;  %v746_v49 = vsel %vm671_vm15, %v1626_v31, 0.0  ;;  %v819_v50 = vsel %vm597_vm12, %v1676_v43, %v744_v46  ;;  %v406_v51 = vadd.s32 104, %v1574_v7 }
  0x7f   : > { %v821_v52 = vsel %vm599_vm13, %v1676_v43, %v746_v49  ;;  %v894_v53 = vsel %vm525_vm10, %v1678_v44, %v819_v50  ;;  %vm458_vm2 = vcmp.eq.s32.totalorder %v405_v47, %v1590_v19  ;;  %vm530_vm0 = vcmp.eq.s32.totalorder %v405_v47, %v1592_v20 }
  0x80   : > { %1068 = vmatprep.subr.bf16.mxu0 %v1026_v48  ;;  %v896_v54 = vsel %vm527_vm11, %v1678_v44, %v821_v52  ;;  %v969_v55 = vsel %vm453_vm9, %v1680_v45, %v894_v53  ;;  %vm460_vm1 = vcmp.eq.s32.totalorder %v406_v51, %v1590_v19  ;;  %vm532_vm3 = vcmp.eq.s32.totalorder %v406_v51, %v1592_v20 }
  0x81   : > { %v971_v56 = vsel %vm455_vm8, %v1680_v45, %v896_v54  ;;  %vm602_vm4 = vcmp.eq.s32.totalorder %v405_v47, %v1594_v21  ;;  %vm604_vm5 = vcmp.eq.s32.totalorder %v406_v51, %v1594_v21  ;;  %vm674_vm6 = vcmp.eq.s32.totalorder %v405_v47, %v1616_v26 }
  0x82   : > { %v1025_v57 = vpack.c.bf16 %v971_v56, %v969_v55  ;;  %vm676_vm7 = vcmp.eq.s32.totalorder %v406_v51, %v1616_v26  ;;  %v749_v58 = vsel %vm674_vm6, %v1596_v22, 0.0  ;;  %vm457_vm9 = vcmp.eq.s32.totalorder %v405_v47, %v1618_v27 }
  0x83   : > { %v751_v59 = vsel %vm676_vm7, %v1596_v22, 0.0  ;;  %v824_v60 = vsel %vm602_vm4, %v1598_v23, %v749_v58  ;;  %vm459_vm10 = vcmp.eq.s32.totalorder %v406_v51, %v1618_v27  ;;  %vm529_vm8 = vcmp.eq.s32.totalorder %v405_v47, %v1620_v28 }
  0x84   : > { %1069 = vmatpush1.bf16.msra.mxu0 %v1025_v57  ;;  %v826_v61 = vsel %vm604_vm5, %v1598_v23, %v751_v59  ;;  %v899_v62 = vsel %vm530_vm0, %v1600_v24, %v824_v60  ;;  %vm531_vm11 = vcmp.eq.s32.totalorder %v406_v51, %v1620_v28  ;;  %vm601_vm12 = vcmp.eq.s32.totalorder %v405_v47, %v1622_v29 }
  0x85   : > { %v901_v63 = vsel %vm532_vm3, %v1600_v24, %v826_v61  ;;  %v974_v0 = vsel %vm458_vm2, %v1602_v25, %v899_v62  ;;  %vm603_vm13 = vcmp.eq.s32.totalorder %v406_v51, %v1622_v29  ;;  %vm673_vm14 = vcmp.eq.s32.totalorder %v405_v47, %v1624_v30 }
  0x86   : > { %v976_v1 = vsel %vm460_vm1, %v1602_v25, %v901_v63  ;;  %vm675_vm15 = vcmp.eq.s32.totalorder %v406_v51, %v1624_v30  ;;  %v748_v2 = vsel %vm673_vm14, %v1626_v31, 0.0  ;;  %v407_v3 = vadd.s32 112, %v1574_v7 }
  0x87   : > { %v1028_v4 = vpack.c.bf16 %v976_v1, %v974_v0  ;;  %v750_v5 = vsel %vm675_vm15, %v1626_v31, 0.0  ;;  %v823_v6 = vsel %vm601_vm12, %v1676_v43, %v748_v2  ;;  %v408_v8 = vadd.s32 120, %v1574_v7 }
  0x88   : > { %v825_v9 = vsel %vm603_vm13, %v1676_v43, %v750_v5  ;;  %v898_v10 = vsel %vm529_vm8, %v1678_v44, %v823_v6  ;;  %vm462_vm2 = vcmp.eq.s32.totalorder %v407_v3, %v1590_v19  ;;  %vm534_vm0 = vcmp.eq.s32.totalorder %v407_v3, %v1592_v20 }
  0x89   : > { %1070 = vmatprep.subr.bf16.mxu0 %v1028_v4  ;;  %v900_v11 = vsel %vm531_vm11, %v1678_v44, %v825_v9  ;;  %v973_v12 = vsel %vm457_vm9, %v1680_v45, %v898_v10  ;;  %vm464_vm1 = vcmp.eq.s32.totalorder %v408_v8, %v1590_v19  ;;  %vm536_vm3 = vcmp.eq.s32.totalorder %v408_v8, %v1592_v20 }
  0x8a   : > { %v975_v13 = vsel %vm459_vm10, %v1680_v45, %v900_v11  ;;  %vm606_vm4 = vcmp.eq.s32.totalorder %v407_v3, %v1594_v21  ;;  %vm608_vm5 = vcmp.eq.s32.totalorder %v408_v8, %v1594_v21  ;;  %vm678_vm6 = vcmp.eq.s32.totalorder %v407_v3, %v1616_v26 }
  0x8b   : > { %v1027_v14 = vpack.c.bf16 %v975_v13, %v973_v12  ;;  %vm680_vm7 = vcmp.eq.s32.totalorder %v408_v8, %v1616_v26  ;;  %v753_v15 = vsel %vm678_vm6, %v1596_v22, 0.0  ;;  %vm461_vm9 = vcmp.eq.s32.totalorder %v407_v3, %v1618_v27 }
  0x8c   : > { %v755_v16 = vsel %vm680_vm7, %v1596_v22, 0.0  ;;  %v828_v18 = vsel %vm606_vm4, %v1598_v23, %v753_v15  ;;  %vm463_vm8 = vcmp.eq.s32.totalorder %v408_v8, %v1618_v27  ;;  %vm533_vm10 = vcmp.eq.s32.totalorder %v407_v3, %v1620_v28 }
  0x8d   : > { %1071 = vmatpush1.bf16.msra.mxu0 %v1027_v14  ;;  %v830_v32 = vsel %vm608_vm5, %v1598_v23, %v755_v16  ;;  %v903_v33 = vsel %vm534_vm0, %v1600_v24, %v828_v18  ;;  %vm535_vm11 = vcmp.eq.s32.totalorder %v408_v8, %v1620_v28  ;;  %vm605_vm12 = vcmp.eq.s32.totalorder %v407_v3, %v1622_v29 }
  0x8e   : > { %v905_v34 = vsel %vm536_vm3, %v1600_v24, %v830_v32  ;;  %v978_v35 = vsel %vm462_vm2, %v1602_v25, %v903_v33  ;;  %vm607_vm13 = vcmp.eq.s32.totalorder %v408_v8, %v1622_v29  ;;  %vm677_vm14 = vcmp.eq.s32.totalorder %v407_v3, %v1624_v30 }
  0x8f   : > { %v980_v36 = vsel %vm464_vm1, %v1602_v25, %v905_v34  ;;  %vm679_vm15 = vcmp.eq.s32.totalorder %v408_v8, %v1624_v30  ;;  %v752_v37 = vsel %vm677_vm14, %v1626_v31, 0.0  ;;  %v409_v38 = vadd.s32 128, %v1574_v7 }
  0x90   : > { %v1030_v39 = vpack.c.bf16 %v980_v36, %v978_v35  ;;  %v754_v40 = vsel %vm679_vm15, %v1626_v31, 0.0  ;;  %v827_v41 = vsel %vm605_vm12, %v1676_v43, %v752_v37  ;;  %v410_v42 = vadd.s32 136, %v1574_v7 }
  0x91   : > { %v829_v17 = vsel %vm607_vm13, %v1676_v43, %v754_v40  ;;  %v902_v46 = vsel %vm533_vm10, %v1678_v44, %v827_v41  ;;  %vm466_vm2 = vcmp.eq.s32.totalorder %v409_v38, %v1590_v19  ;;  %vm538_vm0 = vcmp.eq.s32.totalorder %v409_v38, %v1592_v20 }
  0x92   : > { %1072 = vmatprep.subr.bf16.mxu0 %v1030_v39  ;;  %v904_v47 = vsel %vm535_vm11, %v1678_v44, %v829_v17  ;;  %v977_v48 = vsel %vm461_vm9, %v1680_v45, %v902_v46  ;;  %vm468_vm1 = vcmp.eq.s32.totalorder %v410_v42, %v1590_v19  ;;  %vm540_vm3 = vcmp.eq.s32.totalorder %v410_v42, %v1592_v20 }
  0x93   : > { %v979_v49 = vsel %vm463_vm8, %v1680_v45, %v904_v47  ;;  %vm610_vm4 = vcmp.eq.s32.totalorder %v409_v38, %v1594_v21  ;;  %vm612_vm5 = vcmp.eq.s32.totalorder %v410_v42, %v1594_v21  ;;  %vm682_vm6 = vcmp.eq.s32.totalorder %v409_v38, %v1616_v26 }
  0x94   : > { %v1029_v50 = vpack.c.bf16 %v979_v49, %v977_v48  ;;  %vm684_vm7 = vcmp.eq.s32.totalorder %v410_v42, %v1616_v26  ;;  %v757_v51 = vsel %vm682_vm6, %v1596_v22, 0.0  ;;  %vm465_vm9 = vcmp.eq.s32.totalorder %v409_v38, %v1618_v27 }
  0x95   : > { %v759_v52 = vsel %vm684_vm7, %v1596_v22, 0.0  ;;  %v832_v53 = vsel %vm610_vm4, %v1598_v23, %v757_v51  ;;  %vm467_vm10 = vcmp.eq.s32.totalorder %v410_v42, %v1618_v27  ;;  %vm537_vm8 = vcmp.eq.s32.totalorder %v409_v38, %v1620_v28 }
  0x96   : > { %1073 = vmatpush1.bf16.msra.mxu0 %v1029_v50  ;;  %v834_v54 = vsel %vm612_vm5, %v1598_v23, %v759_v52  ;;  %v907_v55 = vsel %vm538_vm0, %v1600_v24, %v832_v53  ;;  %vm539_vm11 = vcmp.eq.s32.totalorder %v410_v42, %v1620_v28  ;;  %vm609_vm12 = vcmp.eq.s32.totalorder %v409_v38, %v1622_v29 }
  0x97   : > { %v909_v56 = vsel %vm540_vm3, %v1600_v24, %v834_v54  ;;  %v982_v57 = vsel %vm466_vm2, %v1602_v25, %v907_v55  ;;  %vm611_vm13 = vcmp.eq.s32.totalorder %v410_v42, %v1622_v29  ;;  %vm681_vm14 = vcmp.eq.s32.totalorder %v409_v38, %v1624_v30 }
  0x98   : > { %v984_v58 = vsel %vm468_vm1, %v1602_v25, %v909_v56  ;;  %vm683_vm15 = vcmp.eq.s32.totalorder %v410_v42, %v1624_v30  ;;  %v756_v59 = vsel %vm681_vm14, %v1626_v31, 0.0  ;;  %v411_v60 = vadd.s32 144, %v1574_v7 }
  0x99   : > { %v1032_v61 = vpack.c.bf16 %v984_v58, %v982_v57  ;;  %v758_v62 = vsel %vm683_vm15, %v1626_v31, 0.0  ;;  %v831_v63 = vsel %vm609_vm12, %v1676_v43, %v756_v59  ;;  %v412_v0 = vadd.s32 152, %v1574_v7 }
  0x9a   : > { %v833_v1 = vsel %vm611_vm13, %v1676_v43, %v758_v62  ;;  %v906_v2 = vsel %vm537_vm8, %v1678_v44, %v831_v63  ;;  %vm470_vm2 = vcmp.eq.s32.totalorder %v411_v60, %v1590_v19  ;;  %vm542_vm0 = vcmp.eq.s32.totalorder %v411_v60, %v1592_v20 }
  0x9b   : > { %1074 = vmatprep.subr.bf16.mxu0 %v1032_v61  ;;  %v908_v3 = vsel %vm539_vm11, %v1678_v44, %v833_v1  ;;  %v981_v4 = vsel %vm465_vm9, %v1680_v45, %v906_v2  ;;  %vm472_vm1 = vcmp.eq.s32.totalorder %v412_v0, %v1590_v19  ;;  %vm544_vm3 = vcmp.eq.s32.totalorder %v412_v0, %v1592_v20 }
  0x9c   : > { %v983_v5 = vsel %vm467_vm10, %v1680_v45, %v908_v3  ;;  %vm614_vm4 = vcmp.eq.s32.totalorder %v411_v60, %v1594_v21  ;;  %vm616_vm5 = vcmp.eq.s32.totalorder %v412_v0, %v1594_v21  ;;  %vm686_vm6 = vcmp.eq.s32.totalorder %v411_v60, %v1616_v26 }
  0x9d   : > { %v1031_v6 = vpack.c.bf16 %v983_v5, %v981_v4  ;;  %vm688_vm7 = vcmp.eq.s32.totalorder %v412_v0, %v1616_v26  ;;  %v761_v8 = vsel %vm686_vm6, %v1596_v22, 0.0  ;;  %vm469_vm9 = vcmp.eq.s32.totalorder %v411_v60, %v1618_v27 }
  0x9e   : > { %v763_v9 = vsel %vm688_vm7, %v1596_v22, 0.0  ;;  %v836_v10 = vsel %vm614_vm4, %v1598_v23, %v761_v8  ;;  %vm471_vm8 = vcmp.eq.s32.totalorder %v412_v0, %v1618_v27  ;;  %vm541_vm10 = vcmp.eq.s32.totalorder %v411_v60, %v1620_v28 }
  0x9f   : > { %1075 = vmatpush1.bf16.msra.mxu0 %v1031_v6  ;;  %v838_v11 = vsel %vm616_vm5, %v1598_v23, %v763_v9  ;;  %v911_v12 = vsel %vm542_vm0, %v1600_v24, %v836_v10  ;;  %vm543_vm11 = vcmp.eq.s32.totalorder %v412_v0, %v1620_v28  ;;  %vm613_vm12 = vcmp.eq.s32.totalorder %v411_v60, %v1622_v29 }
  0xa0   : > { %v913_v13 = vsel %vm544_vm3, %v1600_v24, %v838_v11  ;;  %v986_v14 = vsel %vm470_vm2, %v1602_v25, %v911_v12  ;;  %vm615_vm13 = vcmp.eq.s32.totalorder %v412_v0, %v1622_v29  ;;  %vm685_vm14 = vcmp.eq.s32.totalorder %v411_v60, %v1624_v30 }
  0xa1   : > { %v988_v15 = vsel %vm472_vm1, %v1602_v25, %v913_v13  ;;  %vm687_vm15 = vcmp.eq.s32.totalorder %v412_v0, %v1624_v30  ;;  %v760_v16 = vsel %vm685_vm14, %v1626_v31, 0.0  ;;  %v413_v18 = vadd.s32 160, %v1574_v7 }
  0xa2   : > { %v1034_v32 = vpack.c.bf16 %v988_v15, %v986_v14  ;;  %v762_v33 = vsel %vm687_vm15, %v1626_v31, 0.0  ;;  %v835_v34 = vsel %vm613_vm12, %v1676_v43, %v760_v16  ;;  %v414_v35 = vadd.s32 168, %v1574_v7 }
  0xa3   : > { %v837_v36 = vsel %vm615_vm13, %v1676_v43, %v762_v33  ;;  %v910_v37 = vsel %vm541_vm10, %v1678_v44, %v835_v34  ;;  %vm474_vm2 = vcmp.eq.s32.totalorder %v413_v18, %v1590_v19  ;;  %vm546_vm0 = vcmp.eq.s32.totalorder %v413_v18, %v1592_v20 }
  0xa4   : > { %1076 = vmatprep.subr.bf16.mxu0 %v1034_v32  ;;  %v912_v38 = vsel %vm543_vm11, %v1678_v44, %v837_v36  ;;  %v985_v39 = vsel %vm469_vm9, %v1680_v45, %v910_v37  ;;  %vm476_vm1 = vcmp.eq.s32.totalorder %v414_v35, %v1590_v19  ;;  %vm548_vm3 = vcmp.eq.s32.totalorder %v414_v35, %v1592_v20 }
  0xa5   : > { %v987_v40 = vsel %vm471_vm8, %v1680_v45, %v912_v38  ;;  %vm618_vm4 = vcmp.eq.s32.totalorder %v413_v18, %v1594_v21  ;;  %vm620_vm5 = vcmp.eq.s32.totalorder %v414_v35, %v1594_v21  ;;  %vm690_vm6 = vcmp.eq.s32.totalorder %v413_v18, %v1616_v26 }
  0xa6   : > { %v1033_v41 = vpack.c.bf16 %v987_v40, %v985_v39  ;;  %vm692_vm7 = vcmp.eq.s32.totalorder %v414_v35, %v1616_v26  ;;  %v765_v42 = vsel %vm690_vm6, %v1596_v22, 0.0  ;;  %vm473_vm9 = vcmp.eq.s32.totalorder %v413_v18, %v1618_v27 }
  0xa7   : > { %v767_v17 = vsel %vm692_vm7, %v1596_v22, 0.0  ;;  %v840_v46 = vsel %vm618_vm4, %v1598_v23, %v765_v42  ;;  %vm475_vm10 = vcmp.eq.s32.totalorder %v414_v35, %v1618_v27  ;;  %vm545_vm8 = vcmp.eq.s32.totalorder %v413_v18, %v1620_v28 }
  0xa8   : > { %1077 = vmatpush1.bf16.msra.mxu0 %v1033_v41  ;;  %v842_v47 = vsel %vm620_vm5, %v1598_v23, %v767_v17  ;;  %v915_v48 = vsel %vm546_vm0, %v1600_v24, %v840_v46  ;;  %vm547_vm11 = vcmp.eq.s32.totalorder %v414_v35, %v1620_v28  ;;  %vm617_vm12 = vcmp.eq.s32.totalorder %v413_v18, %v1622_v29 }
  0xa9   : > { %v917_v49 = vsel %vm548_vm3, %v1600_v24, %v842_v47  ;;  %v990_v50 = vsel %vm474_vm2, %v1602_v25, %v915_v48  ;;  %vm619_vm13 = vcmp.eq.s32.totalorder %v414_v35, %v1622_v29  ;;  %vm689_vm14 = vcmp.eq.s32.totalorder %v413_v18, %v1624_v30 }
  0xaa   : > { %v992_v51 = vsel %vm476_vm1, %v1602_v25, %v917_v49  ;;  %vm691_vm15 = vcmp.eq.s32.totalorder %v414_v35, %v1624_v30  ;;  %v764_v52 = vsel %vm689_vm14, %v1626_v31, 0.0  ;;  %v415_v53 = vadd.s32 176, %v1574_v7 }
  0xab   : > { %v1036_v54 = vpack.c.bf16 %v992_v51, %v990_v50  ;;  %v766_v55 = vsel %vm691_vm15, %v1626_v31, 0.0  ;;  %v839_v56 = vsel %vm617_vm12, %v1676_v43, %v764_v52  ;;  %v416_v57 = vadd.s32 184, %v1574_v7 }
  0xac   : > { %v841_v58 = vsel %vm619_vm13, %v1676_v43, %v766_v55  ;;  %v914_v59 = vsel %vm545_vm8, %v1678_v44, %v839_v56  ;;  %vm478_vm2 = vcmp.eq.s32.totalorder %v415_v53, %v1590_v19  ;;  %vm550_vm0 = vcmp.eq.s32.totalorder %v415_v53, %v1592_v20 }
  0xad   : > { %1078 = vmatprep.subr.bf16.mxu0 %v1036_v54  ;;  %v916_v60 = vsel %vm547_vm11, %v1678_v44, %v841_v58  ;;  %v989_v61 = vsel %vm473_vm9, %v1680_v45, %v914_v59  ;;  %vm480_vm1 = vcmp.eq.s32.totalorder %v416_v57, %v1590_v19  ;;  %vm552_vm3 = vcmp.eq.s32.totalorder %v416_v57, %v1592_v20 }
  0xae   : > { %v991_v62 = vsel %vm475_vm10, %v1680_v45, %v916_v60  ;;  %vm622_vm4 = vcmp.eq.s32.totalorder %v415_v53, %v1594_v21  ;;  %vm624_vm5 = vcmp.eq.s32.totalorder %v416_v57, %v1594_v21  ;;  %vm694_vm6 = vcmp.eq.s32.totalorder %v415_v53, %v1616_v26 }
  0xaf   : > { %v1035_v63 = vpack.c.bf16 %v991_v62, %v989_v61  ;;  %vm696_vm7 = vcmp.eq.s32.totalorder %v416_v57, %v1616_v26  ;;  %v769_v0 = vsel %vm694_vm6, %v1596_v22, 0.0  ;;  %vm477_vm9 = vcmp.eq.s32.totalorder %v415_v53, %v1618_v27 }
  0xb0   : > { %v771_v1 = vsel %vm696_vm7, %v1596_v22, 0.0  ;;  %v844_v2 = vsel %vm622_vm4, %v1598_v23, %v769_v0  ;;  %vm479_vm8 = vcmp.eq.s32.totalorder %v416_v57, %v1618_v27  ;;  %vm549_vm10 = vcmp.eq.s32.totalorder %v415_v53, %v1620_v28 }
  0xb1   : > { %1079 = vmatpush1.bf16.msra.mxu0 %v1035_v63  ;;  %v846_v3 = vsel %vm624_vm5, %v1598_v23, %v771_v1  ;;  %v919_v4 = vsel %vm550_vm0, %v1600_v24, %v844_v2  ;;  %vm551_vm11 = vcmp.eq.s32.totalorder %v416_v57, %v1620_v28  ;;  %vm621_vm12 = vcmp.eq.s32.totalorder %v415_v53, %v1622_v29 }
  0xb2   : > { %v921_v5 = vsel %vm552_vm3, %v1600_v24, %v846_v3  ;;  %v994_v6 = vsel %vm478_vm2, %v1602_v25, %v919_v4  ;;  %vm623_vm13 = vcmp.eq.s32.totalorder %v416_v57, %v1622_v29  ;;  %vm693_vm14 = vcmp.eq.s32.totalorder %v415_v53, %v1624_v30 }
  0xb3   : > { %v996_v8 = vsel %vm480_vm1, %v1602_v25, %v921_v5  ;;  %vm695_vm15 = vcmp.eq.s32.totalorder %v416_v57, %v1624_v30  ;;  %v768_v9 = vsel %vm693_vm14, %v1626_v31, 0.0  ;;  %v417_v10 = vadd.s32 192, %v1574_v7 }
  0xb4   : > { %v1038_v11 = vpack.c.bf16 %v996_v8, %v994_v6  ;;  %v770_v12 = vsel %vm695_vm15, %v1626_v31, 0.0  ;;  %v843_v13 = vsel %vm621_vm12, %v1676_v43, %v768_v9  ;;  %v418_v14 = vadd.s32 200, %v1574_v7 }
  0xb5   : > { %v845_v15 = vsel %vm623_vm13, %v1676_v43, %v770_v12  ;;  %v918_v16 = vsel %vm549_vm10, %v1678_v44, %v843_v13  ;;  %vm482_vm2 = vcmp.eq.s32.totalorder %v417_v10, %v1590_v19  ;;  %vm554_vm0 = vcmp.eq.s32.totalorder %v417_v10, %v1592_v20 }
  0xb6   : > { %1080 = vmatprep.subr.bf16.mxu0 %v1038_v11  ;;  %v920_v18 = vsel %vm551_vm11, %v1678_v44, %v845_v15  ;;  %v993_v32 = vsel %vm477_vm9, %v1680_v45, %v918_v16  ;;  %vm484_vm1 = vcmp.eq.s32.totalorder %v418_v14, %v1590_v19  ;;  %vm556_vm3 = vcmp.eq.s32.totalorder %v418_v14, %v1592_v20 }
  0xb7   : > { %v995_v33 = vsel %vm479_vm8, %v1680_v45, %v920_v18  ;;  %vm626_vm4 = vcmp.eq.s32.totalorder %v417_v10, %v1594_v21  ;;  %vm628_vm5 = vcmp.eq.s32.totalorder %v418_v14, %v1594_v21  ;;  %vm698_vm6 = vcmp.eq.s32.totalorder %v417_v10, %v1616_v26 }
  0xb8   : > { %v1037_v34 = vpack.c.bf16 %v995_v33, %v993_v32  ;;  %vm700_vm7 = vcmp.eq.s32.totalorder %v418_v14, %v1616_v26  ;;  %v773_v35 = vsel %vm698_vm6, %v1596_v22, 0.0  ;;  %vm481_vm9 = vcmp.eq.s32.totalorder %v417_v10, %v1618_v27 }
  0xb9   : > { %v775_v36 = vsel %vm700_vm7, %v1596_v22, 0.0  ;;  %v848_v37 = vsel %vm626_vm4, %v1598_v23, %v773_v35  ;;  %vm483_vm10 = vcmp.eq.s32.totalorder %v418_v14, %v1618_v27  ;;  %vm553_vm8 = vcmp.eq.s32.totalorder %v417_v10, %v1620_v28 }
  0xba   : > { %1081 = vmatpush1.bf16.msra.mxu0 %v1037_v34  ;;  %v850_v38 = vsel %vm628_vm5, %v1598_v23, %v775_v36  ;;  %v923_v39 = vsel %vm554_vm0, %v1600_v24, %v848_v37  ;;  %vm555_vm11 = vcmp.eq.s32.totalorder %v418_v14, %v1620_v28  ;;  %vm625_vm12 = vcmp.eq.s32.totalorder %v417_v10, %v1622_v29 }
  0xbb   : > { %v925_v40 = vsel %vm556_vm3, %v1600_v24, %v850_v38  ;;  %v998_v41 = vsel %vm482_vm2, %v1602_v25, %v923_v39  ;;  %vm627_vm13 = vcmp.eq.s32.totalorder %v418_v14, %v1622_v29  ;;  %vm697_vm14 = vcmp.eq.s32.totalorder %v417_v10, %v1624_v30 }
  0xbc   : > { %v1000_v42 = vsel %vm484_vm1, %v1602_v25, %v925_v40  ;;  %vm699_vm15 = vcmp.eq.s32.totalorder %v418_v14, %v1624_v30  ;;  %v772_v17 = vsel %vm697_vm14, %v1626_v31, 0.0  ;;  %v419_v46 = vadd.s32 208, %v1574_v7 }
  0xbd   : > { %v1040_v47 = vpack.c.bf16 %v1000_v42, %v998_v41  ;;  %v774_v48 = vsel %vm699_vm15, %v1626_v31, 0.0  ;;  %v847_v49 = vsel %vm625_vm12, %v1676_v43, %v772_v17  ;;  %v420_v50 = vadd.s32 216, %v1574_v7 }
  0xbe   : > { %v849_v51 = vsel %vm627_vm13, %v1676_v43, %v774_v48  ;;  %v922_v52 = vsel %vm553_vm8, %v1678_v44, %v847_v49  ;;  %vm486_vm2 = vcmp.eq.s32.totalorder %v419_v46, %v1590_v19  ;;  %vm558_vm0 = vcmp.eq.s32.totalorder %v419_v46, %v1592_v20 }
  0xbf   : > { %1082 = vmatprep.subr.bf16.mxu0 %v1040_v47  ;;  %v924_v53 = vsel %vm555_vm11, %v1678_v44, %v849_v51  ;;  %v997_v54 = vsel %vm481_vm9, %v1680_v45, %v922_v52  ;;  %vm488_vm1 = vcmp.eq.s32.totalorder %v420_v50, %v1590_v19  ;;  %vm560_vm3 = vcmp.eq.s32.totalorder %v420_v50, %v1592_v20  ;;  %v1259_v52 = vld.sshfl [vmem:[%s1571_s12] sm:$0x33 pattern:$0x76325410] }
  0xc0   : > { %v999_v55 = vsel %vm483_vm10, %v1680_v45, %v924_v53  ;;  %vm630_vm4 = vcmp.eq.s32.totalorder %v419_v46, %v1594_v21  ;;  %vm632_vm5 = vcmp.eq.s32.totalorder %v420_v50, %v1594_v21  ;;  %vm702_vm6 = vcmp.eq.s32.totalorder %v419_v46, %v1616_v26 }
  0xc1   : > { %v1039_v56 = vpack.c.bf16 %v999_v55, %v997_v54  ;;  %vm704_vm7 = vcmp.eq.s32.totalorder %v420_v50, %v1616_v26  ;;  %v777_v57 = vsel %vm702_vm6, %v1596_v22, 0.0  ;;  %vm485_vm9 = vcmp.eq.s32.totalorder %v419_v46, %v1618_v27 }
  0xc2   : > { %v779_v58 = vsel %vm704_vm7, %v1596_v22, 0.0  ;;  %v852_v59 = vsel %vm630_vm4, %v1598_v23, %v777_v57  ;;  %vm487_vm8 = vcmp.eq.s32.totalorder %v420_v50, %v1618_v27  ;;  %vm557_vm10 = vcmp.eq.s32.totalorder %v419_v46, %v1620_v28 }
  0xc3   : > { %1083 = vmatpush1.bf16.msra.mxu0 %v1039_v56  ;;  %v854_v60 = vsel %vm632_vm5, %v1598_v23, %v779_v58  ;;  %v927_v61 = vsel %vm558_vm0, %v1600_v24, %v852_v59  ;;  %vm559_vm11 = vcmp.eq.s32.totalorder %v420_v50, %v1620_v28  ;;  %vm629_vm12 = vcmp.eq.s32.totalorder %v419_v46, %v1622_v29  ;;  %v1013_v58 = vld [vmem:[#allocation2] sm:$0xff] }
  0xc4   : > { %v929_v62 = vsel %vm560_vm3, %v1600_v24, %v854_v60  ;;  %v1002_v63 = vsel %vm486_vm2, %v1602_v25, %v927_v61  ;;  %vm631_vm13 = vcmp.eq.s32.totalorder %v420_v50, %v1622_v29  ;;  %vm701_vm14 = vcmp.eq.s32.totalorder %v419_v46, %v1624_v30 }
  0xc5   : > { %v1004_v0 = vsel %vm488_vm1, %v1602_v25, %v929_v62  ;;  %vm703_vm15 = vcmp.eq.s32.totalorder %v420_v50, %v1624_v30  ;;  %v776_v1 = vsel %vm701_vm14, %v1626_v31, 0.0  ;;  %v421_v2 = vadd.s32 224, %v1574_v7 }
  0xc6   : > { %v1042_v3 = vpack.c.bf16 %v1004_v0, %v1002_v63  ;;  %v778_v4 = vsel %vm703_vm15, %v1626_v31, 0.0  ;;  %v851_v5 = vsel %vm629_vm12, %v1676_v43, %v776_v1  ;;  %v422_v6 = vadd.s32 232, %v1574_v7 }
  0xc7   : > { %v853_v8 = vsel %vm631_vm13, %v1676_v43, %v778_v4  ;;  %v926_v9 = vsel %vm557_vm10, %v1678_v44, %v851_v5  ;;  %vm490_vm2 = vcmp.eq.s32.totalorder %v421_v2, %v1590_v19  ;;  %vm562_vm0 = vcmp.eq.s32.totalorder %v421_v2, %v1592_v20 }
  0xc8   : > { %1084 = vmatprep.subr.bf16.mxu0 %v1042_v3  ;;  %v928_v10 = vsel %vm559_vm11, %v1678_v44, %v853_v8  ;;  %v1001_v11 = vsel %vm485_vm9, %v1680_v45, %v926_v9  ;;  %vm492_vm1 = vcmp.eq.s32.totalorder %v422_v6, %v1590_v19  ;;  %vm564_vm3 = vcmp.eq.s32.totalorder %v422_v6, %v1592_v20 }
  0xc9   : > { %v1003_v12 = vsel %vm487_vm8, %v1680_v45, %v928_v10  ;;  %vm634_vm4 = vcmp.eq.s32.totalorder %v421_v2, %v1594_v21  ;;  %vm636_vm5 = vcmp.eq.s32.totalorder %v422_v6, %v1594_v21  ;;  %vm706_vm6 = vcmp.eq.s32.totalorder %v421_v2, %v1616_v26 }
  0xca   : > { %v1041_v13 = vpack.c.bf16 %v1003_v12, %v1001_v11  ;;  %vm708_vm7 = vcmp.eq.s32.totalorder %v422_v6, %v1616_v26  ;;  %v781_v14 = vsel %vm706_vm6, %v1596_v22, 0.0  ;;  %vm489_vm9 = vcmp.eq.s32.totalorder %v421_v2, %v1618_v27 }
  0xcb   : > { %v783_v15 = vsel %vm708_vm7, %v1596_v22, 0.0  ;;  %v856_v16 = vsel %vm634_vm4, %v1598_v23, %v781_v14  ;;  %vm491_vm10 = vcmp.eq.s32.totalorder %v422_v6, %v1618_v27  ;;  %vm561_vm8 = vcmp.eq.s32.totalorder %v421_v2, %v1620_v28 }
  0xcc   : > { %1085 = vmatpush1.bf16.msra.mxu0 %v1041_v13  ;;  %v858_v18 = vsel %vm636_vm5, %v1598_v23, %v783_v15  ;;  %v931_v32 = vsel %vm562_vm0, %v1600_v24, %v856_v16  ;;  %vm563_vm11 = vcmp.eq.s32.totalorder %v422_v6, %v1620_v28  ;;  %vm633_vm12 = vcmp.eq.s32.totalorder %v421_v2, %v1622_v29 }
  0xcd   : > { %v933_v33 = vsel %vm564_vm3, %v1600_v24, %v858_v18  ;;  %v1006_v34 = vsel %vm490_vm2, %v1602_v25, %v931_v32  ;;  %vm635_vm13 = vcmp.eq.s32.totalorder %v422_v6, %v1622_v29  ;;  %vm705_vm14 = vcmp.eq.s32.totalorder %v421_v2, %v1624_v30 }
  0xce   : > { %v1008_v35 = vsel %vm492_vm1, %v1602_v25, %v933_v33  ;;  %vm707_vm15 = vcmp.eq.s32.totalorder %v422_v6, %v1624_v30  ;;  %v780_v36 = vsel %vm705_vm14, %v1626_v31, 0.0  ;;  %v423_v37 = vadd.s32 240, %v1574_v7 }
  0xcf   : > { %v1044_v38 = vpack.c.bf16 %v1008_v35, %v1006_v34  ;;  %v782_v39 = vsel %vm707_vm15, %v1626_v31, 0.0  ;;  %v855_v40 = vsel %vm633_vm12, %v1676_v43, %v780_v36  ;;  %v424_v41 = vadd.s32 248, %v1574_v7 }
  0xd0   : > { %v857_v42 = vsel %vm635_vm13, %v1676_v43, %v782_v39  ;;  %v930_v17 = vsel %vm561_vm8, %v1678_v44, %v855_v40  ;;  %vm494_vm2 = vcmp.eq.s32.totalorder %v423_v37, %v1590_v19  ;;  %vm566_vm1 = vcmp.eq.s32.totalorder %v423_v37, %v1592_v20 }
  0xd1   : > { %1086 = vmatprep.subr.bf16.mxu0 %v1044_v38  ;;  %v932_v46 = vsel %vm563_vm11, %v1678_v44, %v857_v42  ;;  %v1005_v47 = vsel %vm489_vm9, %v1680_v45, %v930_v17  ;;  %vm496_vm0 = vcmp.eq.s32.totalorder %v424_v41, %v1590_v19  ;;  %vm638_vm3 = vcmp.eq.s32.totalorder %v423_v37, %v1594_v21 }
  0xd2   : > { %v1007_v7 = vsel %vm491_vm10, %v1680_v45, %v932_v46  ;;  %vm640_vm4 = vcmp.eq.s32.totalorder %v424_v41, %v1594_v21  ;;  %vm710_vm5 = vcmp.eq.s32.totalorder %v423_v37, %v1616_v26  ;;  %vm568_vm6 = vcmp.eq.s32.totalorder %v424_v41, %v1592_v20 }
  0xd3   : > { %v1043_v48 = vpack.c.bf16 %v1007_v7, %v1005_v47  ;;  %vm712_vm7 = vcmp.eq.s32.totalorder %v424_v41, %v1616_v26  ;;  %v785_v49 = vsel %vm710_vm5, %v1596_v22, 0.0  ;;  %vm493_vm9 = vcmp.eq.s32.totalorder %v423_v37, %v1618_v27 }
  0xd4   : > { %v787_v50 = vsel %vm712_vm7, %v1596_v22, 0.0  ;;  %v860_v51 = vsel %vm638_vm3, %v1598_v23, %v785_v49  ;;  %vm565_vm10 = vcmp.eq.s32.totalorder %v423_v37, %v1620_v28  ;;  %vm567_vm8 = vcmp.eq.s32.totalorder %v424_v41, %v1620_v28 }
  0xd5   : > { %1087 = vmatpush1.bf16.msra.mxu0 %v1043_v48  ;;  %v862_v21 = vsel %vm640_vm4, %v1598_v23, %v787_v50  ;;  %v935_v53 = vsel %vm566_vm1, %v1600_v24, %v860_v51  ;;  %vm637_vm11 = vcmp.eq.s32.totalorder %v423_v37, %v1622_v29  ;;  %vm639_vm12 = vcmp.eq.s32.totalorder %v424_v41, %v1622_v29 }
  0xd6   : > { %v937_v22 = vsel %vm568_vm6, %v1600_v24, %v862_v21  ;;  %v1010_v26 = vsel %vm494_vm2, %v1602_v25, %v935_v53  ;;  %vm709_vm13 = vcmp.eq.s32.totalorder %v423_v37, %v1624_v30  ;;  %vm711_vm14 = vcmp.eq.s32.totalorder %v424_v41, %v1624_v30 }
  0xd7   : > { %v1012_v23 = vsel %vm496_vm0, %v1602_v25, %v937_v22  ;;  %v784_v20 = vsel %vm709_vm13, %v1626_v31, 0.0  ;;  %v1055_v54 = vcombine.high %v1259_v52, %v1259_v52  ;;  %vm495_vm15 = vcmp.eq.s32.totalorder %v424_v41, %v1618_v27 }
  0xd8   : > { %v1046_v55 = vpack.c.bf16 %v1012_v23, %v1010_v26  ;;  %v786_v24 = vsel %vm711_vm14, %v1626_v31, 0.0  ;;  %v859_v56 = vsel %vm637_vm11, %v1676_v43, %v784_v20 }
  0xd9   : > { %v861_v29 = vsel %vm639_vm12, %v1676_v43, %v786_v24  ;;  %v934_v57 = vsel %vm565_vm10, %v1678_v44, %v859_v56  ;;  %1090 = vmatprep.mubr.bf16.mxu0 %v1055_v54 }
  0xda   : > { %1088 = vmatprep.subr.bf16.mxu0 %v1046_v55  ;;  %v936_v19 = vsel %vm567_vm8, %v1678_v44, %v861_v29  ;;  %v1009_v25 = vsel %vm493_vm9, %v1680_v45, %v934_v57 }
  0xdb   : > { %v1011_v30 = vsel %vm495_vm15, %v1680_v45, %v936_v19 }
  0xdc   : > { %v1045_v31 = vpack.c.bf16 %v1011_v30, %v1009_v25 }
  0xde   : > { %1089 = vmatpush1.bf16.msra.mxu0 %v1045_v31 }
  0xe1   : > { %1091 = vmatmul.mubr.bf16.vlgmr.msra.gmra.mrb[0].mxu0 %v1259_v52 }
 0x1b4   : > { %v1092_v43 = vpop.f32.mrb[0].mxu0 }
 0x1b5   : > { %v1094_v59 = vpop.f32.mrb[1].mxu0 }
 0x1b6   : > { %v1101_v60 = vcombine.low %v1092_v43, %v1094_v59  ;;  %v1096_v61 = vpop.f32.mrb[2].mxu0 }
 0x1b7   : > { %v1097_v62 = vpop.f32.mrb[3].mxu0 }
 0x1b8   : > { %v1103_v63 = vadd.f32 %v1101_v60, %v1013_v58 }
 0x1ba   : > { %1104 = vst [vmem:[#allocation2] sm:$0xff] %v1103_v63 }
 0x1bb PF: > { %s2490_s23 = scalar_lea.hbm %s2541_s6, %s1550_s24  ;;  %s1127_s27 = sshll.u32 %s307_s26, 4  ;;  %s1128_s27 = int_to_ptr.vmem [resolvable:$true] %s1127_s27 }
 0x1bc   : > { %s2551_s28 = sand.u32 1, %s1426_s11   ;;  %s1362_s0 = scalar_lea.vmem %s1128_s27, 128 }
 0x1bd   : > { %s1111_s29 = scalar_lea.sflag [#allocation8], %s2551_s28  ;;  %p1363_p3 = scmp.ne.s32.totalorder %s1128_s27, %s1362_s0 }
 0x1be   : > { %s1448_s1 = smov [#allocation7]  }
 0x1bf   : > { %p1364_p4 = pnand %p1363_p3, %p1533_p5  ;;  %s1366_s30 = sshll.u32 %s1448_s1, 4  ;;  %s1367_s30 = int_to_ptr.vmem [resolvable:$false] %s1366_s30 }
 0x1c0   : > { %s1368_s8 = scalar_lea.vmem %s1367_s30, 256  ;;  %p1369_p7 = scmp.lt.s32.totalorder %s1128_s27, %s1367_s30 }
 0x1c1   : > { %v1108_v28 = vld [vmem:[#allocation2] sm:$0xff]  ;;  %p1365_p6 = pneg %p1364_p4  ;;  %p1370_p8 = scmp.lt.s32.totalorder %s1368_s8, %s1362_s0 }
 0x1c2   : > { %1109 = vst [vmem:[%s307_s26] sm:$0xff] %v1108_v28 }
 0x1c3   : > { %p1371_p10 = por %p1370_p8, %p1369_p7 }
 0x1c5   : > { %p1372_p11 = pnand %p1371_p10, %p1365_p6 }
 0x1c7   : > { %1375 = shalt.err (!%p1372_p11)
}
 0x1c8   : > { %s1376_s24 = scalar_lea.hbm %s2490_s23, 128  ;;  %s1380_s15 = scalar_lea.hbm %s2541_s6, 256 }
 0x1c9   : > { %p1377_p12 = scmp.ne.s32.totalorder %s2490_s23, %s1376_s24  ;;  %p1381_p1 = scmp.lt.u32.totalorder %s2490_s23, %s2541_s6 }
 0x1ca   : > { %p1382_p2 = scmp.lt.u32.totalorder %s1380_s15, %s1376_s24  ;;  %p1384_p4 = scmp.lt.u32.totalorder %s1376_s24, %s2490_s23 }
 0x1cb   : > { %p1378_p13 = pnand %p1377_p12, %p1533_p5 }
 0x1cc   : > { %p1383_p3 = por %p1382_p2, %p1381_p1 }
 0x1cd   : > { %p1379_p0 = pneg %p1378_p13 }
 0x1ce   : > { %p1385_p6 = por %p1384_p4, %p1383_p3 }
 0x1d0   : > { %p1386_p7 = pnand %p1385_p6, %p1379_p0 }
 0x1d2   : > { %1389 = shalt.err (!%p1386_p7)
}
 0x1d3   : > { %1267 = dma.vmem_to_hbm [thread:$0]  (%p1533_p5), %s1128_s27, 128, %s2490_s23, %s1111_s29  }
 0x1d4 PF: > { %p1273_p8 = scmp.ge.s32.totalorder %s1442_s14, 2  ;;  %s1139_s20 = sand.u32 1, %s1422_s10  }
 0x1d5   : > { %s1140_s12 = scalar_lea.sflag [#allocation8], %s1139_s20 }
 0x1d6   : > { %p1270_p10 = pnand %p1273_p8, %p1540_p9 }
 0x1d8   : > { %1417 = dma.done.wait (!%p1270_p10), %s1140_s12, 128  }
 0x1d9   : > { %1419 = vsyncadd (!%p1270_p10), %s1140_s12, 4294967168  ;;  %s33_s14 = sadd.s32 1, %s1442_s14   ;;  %s2552_s12 = sld [smem:[#allocation11_spill]] }
 0x1da   : > { %p30_p11 = scmp.ge.s32.totalorder %s33_s14, 4   ;;  %s2553_s13 = sld [smem:[#allocation12_spill]] }
 0x1db   : > { %s2554_s10 = smov %s1426_s11  ;;  %s2555_s11 = smov %s1430_s2 }
 0x1dc   : > { %s2556_s2 = smov %s1546_s22  ;;  %32 = sbr.rel (!%p30_p11) target bundleno = 39 (0x27), region = 88 }
 0x1e3   :  { %1145 = vsyncpa [#allocation8], 1 }
 0x1e4   :  { %1147 = vsyncpa [#allocation8 + $0x1], 1 }

</bundles_post_ra>
